<compile_context>
chip_gen: v7x
topology: tpu7x:2x2x1
jax: 0.10.0
libtpu: 0.0.40
codegen_flags: <defaults>
</compile_context>

<pallas_src>
import math

import jax
import jax.numpy as jnp
from jax.experimental import pallas as pl
from jax.experimental.pallas import tpu as pltpu

# ---------------- model hyper-parameters (small synthetic ViT) ----------------
B = 2             # batch
C = 3             # image channels
IMG = 16          # image_size (square)
PATCH = 8         # patch size  -> 2x2 = 4 patches
GRID = IMG // PATCH
NPATCH = GRID * GRID
SEQ = NPATCH + 1  # + class token
CPP = C * PATCH * PATCH
D = 32            # transformer width
HEADS = 4
DH = D // HEADS
MLP = 4 * D       # 128
LAYERS = 2
EMBED = 16        # output embedding dim
SCALE = 1.0 / math.sqrt(DH)

# --- packed-weight layout constants -------------------------------------------
VLANE = 128                    # vector-slab lane width (== MLP)
QKV_OFF = 0                    # lanes [0, 96)   : qkv_w
ATTN_OFF = 128                 # lanes [128,160) : attn output proj (128-aligned)
FC1_OFF = 256                  # lanes [256,384) : fc1_w
WIDE = FC1_OFF + MLP           # 384 lanes total per layer slab
# vector-slab row layout
R_ADDVEC = 0                   # rows [0, SEQ)   : cls/pos/conv-bias add vector
R_LNPRE_G = SEQ
R_LNPRE_B = SEQ + 1
R_LNPOST_G = SEQ + 2
R_LNPOST_B = SEQ + 3
R_BLK = SEQ + 4                # per-layer rows start here
ROWS_PER_BLK = 8               # ln1_g, ln1_b, qkv_b, attn_b, ln2_g, ln2_b, fc1_b, fc2_b
NVEC = R_BLK + ROWS_PER_BLK * LAYERS

# CLIP / CLOOB channel normalization constants
CLIP_MEAN = jnp.array([0.48145466, 0.4578275, 0.40821073], dtype=jnp.float32)
CLIP_STD = jnp.array([0.26862954, 0.26130258, 0.27577711], dtype=jnp.float32)

# TODO(synk): tokenizer / text encoder (encode_texts) and the optional input
# resize in encode_images are not translated; checkpoint loading is replaced by
# deterministic synthetic parameters.


# ----------------------------- parameter setup --------------------------------
def init_params(key):
    def nrm(k, shape, scale=0.02):
        return (scale * jax.random.normal(k, shape)).astype(jnp.float32)

    keys = jax.random.split(key, 8 + LAYERS)
    params = {
        "patch_w": nrm(keys[0], (CPP, D)),            # conv1 (bias-free in CLIP)
        "patch_b": jnp.zeros((1, D), jnp.float32),
        "cls": nrm(keys[1], (D,)),
        "pos": nrm(keys[2], (SEQ, D)),
        "ln_pre_g": jnp.ones((1, D), jnp.float32),
        "ln_pre_b": jnp.zeros((1, D), jnp.float32),
        "ln_post_g": jnp.ones((1, D), jnp.float32),
        "ln_post_b": jnp.zeros((1, D), jnp.float32),
        "proj": nrm(keys[3], (D, EMBED)),
        "blocks": [],
    }
    for l in range(LAYERS):
        bk = jax.random.split(keys[8 + l], 4)
        params["blocks"].append({
            "ln1_g": jnp.ones((1, D), jnp.float32),
            "ln1_b": jnp.zeros((1, D), jnp.float32),
            "qkv_w": nrm(bk[0], (D, 3 * D)),
            "qkv_b": jnp.zeros((1, 3 * D), jnp.float32),
            "proj_w": nrm(bk[1], (D, D)),
            "proj_b": jnp.zeros((1, D), jnp.float32),
            "ln2_g": jnp.ones((1, D), jnp.float32),
            "ln2_b": jnp.zeros((1, D), jnp.float32),
            "fc1_w": nrm(bk[2], (D, MLP)),
            "fc1_b": jnp.zeros((1, MLP), jnp.float32),
            "fc2_w": nrm(bk[3], (MLP, D)),
            "fc2_b": jnp.zeros((1, D), jnp.float32),
        })
    return params


def pack_params(params):
    """Host-side (tiny, once per call) repack:
       - fold CLIP mean/std into the patch-embed weights (conv is linear),
       - bake cls token + positional embedding + conv bias into one add-vector,
       - consolidate all (1,D)/(1,MLP) vectors into one lane-dense (NVEC,128)
         f32 slab, and qkv_w | attn_w | fc1_w into one 128-aligned (L,D,384)
         bf16 slab, so the kernel needs only 6 inputs and lane-dense matmuls."""
    inv_std = 1.0 / CLIP_STD
    scale_rows = jnp.repeat(inv_std, PATCH * PATCH)            # (CPP,) channel-major
    mvec = jnp.repeat(CLIP_MEAN * inv_std, PATCH * PATCH)      # (CPP,)
    patch_w_fold = params["patch_w"] * scale_rows[:, None]     # W / std (per channel row)
    patch_b_fold = params["patch_b"][0] - mvec @ params["patch_w"]   # (D,)

    # addvec row 0 turns the zero "patch" row into the class token; rows 1..
    # carry pos-embedding + folded conv bias.
    addvec = params["pos"] + patch_b_fold[None, :]
    addvec = addvec.at[0].set(params["cls"] + params["pos"][0])

    # ---- lane-dense vector slab --------------------------------------------
    def row(v, width):
        v = jnp.asarray(v, jnp.float32).reshape(-1)[:width]
        return jnp.zeros((VLANE,), jnp.float32).at[:width].set(v)

    rows = [row(addvec[i], D) for i in range(SEQ)]
    rows += [row(params["ln_pre_g"], D), row(params["ln_pre_b"], D),
             row(params["ln_post_g"], D), row(params["ln_post_b"], D)]
    for blk in params["blocks"]:
        rows += [row(blk["ln1_g"], D), row(blk["ln1_b"], D),
                 row(blk["qkv_b"], 3 * D), row(blk["proj_b"], D),
                 row(blk["ln2_g"], D), row(blk["ln2_b"], D),
                 row(blk["fc1_b"], MLP), row(blk["fc2_b"], D)]
    vec_slab = jnp.stack(rows)                                  # (NVEC, VLANE) f32

    # ---- lane-dense per-layer matmul-weight slab ----------------------------
    wides = []
    for blk in params["blocks"]:
        w = jnp.zeros((D, WIDE), jnp.float32)
        w = w.at[:, QKV_OFF:QKV_OFF + 3 * D].set(blk["qkv_w"])
        w = w.at[:, ATTN_OFF:ATTN_OFF + D].set(blk["proj_w"])
        w = w.at[:, FC1_OFF:FC1_OFF + MLP].set(blk["fc1_w"])
        wides.append(w)
    wide_w = jnp.stack(wides).astype(jnp.bfloat16)              # (L, D, WIDE)

    fc2_w = jnp.stack([blk["fc2_w"] for blk in params["blocks"]]
                      ).astype(jnp.bfloat16)                    # (L, MLP, D)

    return {
        "patch_w": patch_w_fold.astype(jnp.bfloat16),           # (CPP, D)
        "vecs": vec_slab,                                       # (NVEC, VLANE)
        "wide_w": wide_w,                                       # (L, D, WIDE)
        "fc2_w": fc2_w,                                         # (L, MLP, D)
        "proj": params["proj"].astype(jnp.bfloat16),            # (D, EMBED)
    }


# ------------------------------ fused kernel -----------------------------------
def _cloob_kernel(
    patches_ref,   # (1, SEQ, CPP) f32   row 0 is zeros (-> class token)
    patch_w_ref,   # (CPP, D)      bf16  CLIP norm folded in
    vec_ref,       # (NVEC, VLANE) f32   all LN gains/biases, biases, addvec
    wide_w_ref,    # (L, D, WIDE)  bf16  qkv_w | attn_w | fc1_w
    fc2_w_ref,     # (L, MLP, D)   bf16
    proj_ref,      # (D, EMBED)    bf16
    out_ref,       # (1, 1, EMBED) f32
):
    def vrow(r, width):
        return vec_ref[r:r + 1, 0:width]                        # (1, width) f32

    def ln(x, gr, br):
        mu = jnp.mean(x, axis=-1, keepdims=True)
        xc = x - mu
        var = jnp.mean(xc * xc, axis=-1, keepdims=True)
        return xc * jax.lax.rsqrt(var + 1e-5) * vrow(gr, D) + vrow(br, D)

    def gelu_erf(x):
        # Exact-form (erf) GELU, matching PyTorch nn.GELU default, via the
        # Abramowitz–Stegun 7.1.26 erf polynomial (|erf error| < 1.5e-7).
        # TODO(synk): if the real CLOOB checkpoint uses QuickGELU
        # (x * sigmoid(1.702x)), swap this accordingly.
        z = x * (1.0 / math.sqrt(2.0))
        az = jnp.abs(z)
        t = 1.0 / (1.0 + 0.3275911 * az)
        poly = t * (0.254829592 + t * (-0.284496736 + t * (
            1.421413741 + t * (-1.453152027 + t * 1.061405429))))
        erf_az = 1.0 - poly * jnp.exp(-az * az)
        erf_z = jnp.where(z >= 0.0, erf_az, -erf_az)
        return 0.5 * x * (1.0 + erf_z)

    # patch embed (CLIP normalization folded) + class token + positional embed
    addvec = vec_ref[R_ADDVEC:R_ADDVEC + SEQ, 0:D]              # (SEQ, D)
    x = jnp.dot(patches_ref[0].astype(jnp.bfloat16), patch_w_ref[...],
                preferred_element_type=jnp.float32) + addvec
    # ln_pre
    x = ln(x, R_LNPRE_G, R_LNPRE_B)

    for l in range(LAYERS):
        base = R_BLK + ROWS_PER_BLK * l
        w_l = wide_w_ref[l]                                     # (D, WIDE) bf16

        # ------------------- multi-head self-attention (pre-LN) ---------------
        h = ln(x, base + 0, base + 1)
        # one lane-dense (SEQ,D)x(D,3D) matmul for all of Q,K,V
        qkv = jnp.dot(h.astype(jnp.bfloat16), w_l[:, QKV_OFF:QKV_OFF + 3 * D],
                      preferred_element_type=jnp.float32) + vrow(base + 2, 3 * D)
        heads = []
        for hd in range(HEADS):
            q = qkv[:, hd * DH:(hd + 1) * DH]                   # (SEQ, DH)
            k = qkv[:, D + hd * DH:D + (hd + 1) * DH]
            v = qkv[:, 2 * D + hd * DH:2 * D + (hd + 1) * DH]
            # scores = q @ k^T (contract DH dims directly, no transpose)
            s = jax.lax.dot_general(
                q, k, dimension_numbers=(((1,), (1,)), ((), ())),
                preferred_element_type=jnp.float32) * SCALE
            s = s - jnp.max(s, axis=-1, keepdims=True)
            p = jnp.exp(s)
            p = p * pl.reciprocal(jnp.sum(p, axis=-1, keepdims=True), approx=True)
            heads.append(jnp.dot(p, v, preferred_element_type=jnp.float32))
        o = jnp.concatenate(heads, axis=-1)                     # (SEQ, D)
        # one lane-dense (SEQ,D)x(D,D) output projection
        attn = jnp.dot(o.astype(jnp.bfloat16), w_l[:, ATTN_OFF:ATTN_OFF + D],
                       preferred_element_type=jnp.float32) + vrow(base + 3, D)
        x = x + attn

        # ----------------------------- MLP (pre-LN) ----------------------------
        h = ln(x, base + 4, base + 5)
        h = jnp.dot(h.astype(jnp.bfloat16), w_l[:, FC1_OFF:FC1_OFF + MLP],
                    preferred_element_type=jnp.float32) + vrow(base + 6, MLP)
        h = gelu_erf(h)
        h = jnp.dot(h.astype(jnp.bfloat16), fc2_w_ref[l],
                    preferred_element_type=jnp.float32) + vrow(base + 7, D)
        x = x + h

    # ln_post on class token, projection, F.normalize(dim=-1)
    pooled = ln(x[0:1, :], R_LNPOST_G, R_LNPOST_B)
    emb = jnp.dot(pooled.astype(jnp.bfloat16), proj_ref[...],
                  preferred_element_type=jnp.float32)
    n2 = jnp.sum(emb * emb, axis=-1, keepdims=True)
    out_ref[0] = emb * jax.lax.rsqrt(jnp.maximum(n2, 1e-24))    # eps=1e-12 on the norm


# ------------------------------ forward (glue) ----------------------------------
def cloob_encode_images(params, images):
    """images: (B, C, H, W) float32 in [0, 1], NCHW like PyTorch."""
    b, c, hh, ww = images.shape
    assert (hh, ww) == (IMG, IMG) and c == C

    packed = pack_params(params)

    # unfold into per-patch pixel rows (channel-major, matching conv1 weight
    # layout), with a zero row 0 that `addvec` turns into the class token.
    patches = images.reshape(b, c, GRID, PATCH, GRID, PATCH)
    patches = patches.transpose(0, 2, 4, 1, 3, 5).reshape(b, NPATCH, CPP)
    patches = jnp.concatenate(
        [jnp.zeros((b, 1, CPP), jnp.float32), patches], axis=1)       # (b, SEQ, CPP)

    def _rep(shape):
        zeros = (0,) * len(shape)
        return pl.BlockSpec(shape, lambda i, z=zeros: z)   # weights resident across grid

    weights = [packed["patch_w"], packed["vecs"], packed["wide_w"],
               packed["fc2_w"], packed["proj"]]

    out = pl.pallas_call(
        _cloob_kernel,
        out_shape=jax.ShapeDtypeStruct((b, 1, EMBED), jnp.float32),
        grid=(b,),
        in_specs=[pl.BlockSpec((1, SEQ, CPP), lambda i: (i, 0, 0))]
                 + [_rep(w.shape) for w in weights],
        out_specs=pl.BlockSpec((1, 1, EMBED), lambda i: (i, 0, 0)),
        compiler_params=pltpu.CompilerParams(
            dimension_semantics=("parallel",)),
        # TODO(synk): on v7x, if xprof shows both batch elements on one TC,
        # switch this axis to pltpu.CORE_PARALLEL (or pl.core_map) for 2x.
    )(patches, *weights)
    return out.reshape(b, EMBED)


# ----------------------------------- main ----------------------------------------
if __name__ == "__main__":
    key = jax.random.PRNGKey(0)
    pkey, ikey = jax.random.split(key)
    params = init_params(pkey)
    images = jax.random.uniform(ikey, (B, C, IMG, IMG), dtype=jnp.float32)

    out = jax.block_until_ready(cloob_encode_images(params, images))

    assert out.shape == (B, EMBED)
    assert out.dtype == jnp.float32
    # unit-norm check from F.normalize
    norms = jnp.linalg.norm(out, axis=-1)
    assert bool(jnp.all(jnp.abs(norms - 1.0) < 1e-4))
    print("KERNEL_OK")
</pallas_src>

<mosaic_0001>
module attributes {stable_mosaic.version = 11 : i64} {
  func.func @_cloob_kernel(%arg0: i32, %arg1: memref<1x5x192xf32, #tpu.memory_space<vmem>>, %arg2: memref<192x32xbf16, #tpu.memory_space<vmem>>, %arg3: memref<25x128xf32, #tpu.memory_space<vmem>>, %arg4: memref<2x32x384xbf16, #tpu.memory_space<vmem>>, %arg5: memref<2x128x32xbf16, #tpu.memory_space<vmem>>, %arg6: memref<32x16xbf16, #tpu.memory_space<vmem>>, %arg7: memref<1x1x16xf32, #tpu.memory_space<vmem>>) attributes {dimension_semantics = [#tpu.dimension_semantics<parallel>], iteration_bounds = array<i64: 2>, scalar_prefetch = 0 : i64, scratch_operands = 0 : i64, tpu.core_type = #tpu.core_type<tc>, window_params = [{transform_indices = @transform_0, window_bounds = array<i64: 1, 5, 192>}, {pipeline_mode = #tpu.pipeline_mode<synchronous>, transform_indices = @transform_1, window_bounds = array<i64: 192, 32>}, {pipeline_mode = #tpu.pipeline_mode<synchronous>, transform_indices = @transform_2, window_bounds = array<i64: 25, 128>}, {pipeline_mode = #tpu.pipeline_mode<synchronous>, transform_indices = @transform_3, window_bounds = array<i64: 2, 32, 384>}, {pipeline_mode = #tpu.pipeline_mode<synchronous>, transform_indices = @transform_4, window_bounds = array<i64: 2, 128, 32>}, {pipeline_mode = #tpu.pipeline_mode<synchronous>, transform_indices = @transform_5, window_bounds = array<i64: 32, 16>}, {transform_indices = @transform_6, window_bounds = array<i64: 1, 1, 16>}]} {
    %c0 = arith.constant 0 : index
    %c0_0 = arith.constant 0 : index
    %0 = vector.load %arg3[%c0, %c0_0] : memref<25x128xf32, #tpu.memory_space<vmem>>, vector<5x32xf32>
    %c0_1 = arith.constant 0 : index
    %c0_2 = arith.constant 0 : index
    %c0_3 = arith.constant 0 : index
    %1 = vector.load %arg1[%c0_1, %c0_2, %c0_3] : memref<1x5x192xf32, #tpu.memory_space<vmem>>, vector<1x5x192xf32>
    %2 = vector.shape_cast %1 : vector<1x5x192xf32> to vector<5x192xf32>
    %3 = arith.truncf %2 : vector<5x192xf32> to vector<5x192xbf16>
    %c0_4 = arith.constant 0 : index
    %c0_5 = arith.constant 0 : index
    %4 = vector.load %arg2[%c0_4, %c0_5] : memref<192x32xbf16, #tpu.memory_space<vmem>>, vector<192x32xbf16>
    %cst = arith.constant dense<0.000000e+00> : vector<5x32xf32>
    %5 = tpu.matmul %3, %4, %cst {dimension_numbers = #tpu.dot_dimension_numbers<[1], [0], [0], [1], [0, 0, 1, 1], [], []>} : vector<5x192xbf16>, vector<192x32xbf16>, vector<5x32xf32> -> vector<5x32xf32>
    %6 = arith.addf %5, %0 : vector<5x32xf32>
    %cst_6 = arith.constant dense<0.000000e+00> : vector<5xf32>
    %7 = vector.multi_reduction <add>, %6, %cst_6 [1] : vector<5x32xf32> to vector<5xf32>
    %8 = vector.shape_cast %7 : vector<5xf32> to vector<5x1xf32>
    %cst_7 = arith.constant 3.200000e+01 : f32
    %9 = vector.broadcast %cst_7 : f32 to vector<5x1xf32>
    %10 = arith.divf %8, %9 : vector<5x1xf32>
    %11 = vector.broadcast %10 : vector<5x1xf32> to vector<5x32xf32>
    %12 = arith.subf %6, %11 : vector<5x32xf32>
    %13 = arith.mulf %12, %12 : vector<5x32xf32>
    %cst_8 = arith.constant dense<0.000000e+00> : vector<5xf32>
    %14 = vector.multi_reduction <add>, %13, %cst_8 [1] : vector<5x32xf32> to vector<5xf32>
    %15 = vector.shape_cast %14 : vector<5xf32> to vector<5x1xf32>
    %cst_9 = arith.constant 3.200000e+01 : f32
    %16 = vector.broadcast %cst_9 : f32 to vector<5x1xf32>
    %17 = arith.divf %15, %16 : vector<5x1xf32>
    %cst_10 = arith.constant 9.99999974E-6 : f32
    %18 = vector.broadcast %cst_10 : f32 to vector<5x1xf32>
    %19 = arith.addf %17, %18 : vector<5x1xf32>
    %20 = math.rsqrt %19 : vector<5x1xf32>
    %21 = vector.broadcast %20 : vector<5x1xf32> to vector<5x32xf32>
    %22 = arith.mulf %12, %21 : vector<5x32xf32>
    %c5 = arith.constant 5 : index
    %c0_11 = arith.constant 0 : index
    %23 = vector.load %arg3[%c5, %c0_11] : memref<25x128xf32, #tpu.memory_space<vmem>>, vector<1x32xf32>
    %24 = vector.broadcast %23 : vector<1x32xf32> to vector<5x32xf32>
    %25 = arith.mulf %22, %24 : vector<5x32xf32>
    %c6 = arith.constant 6 : index
    %c0_12 = arith.constant 0 : index
    %26 = vector.load %arg3[%c6, %c0_12] : memref<25x128xf32, #tpu.memory_space<vmem>>, vector<1x32xf32>
    %27 = vector.broadcast %26 : vector<1x32xf32> to vector<5x32xf32>
    %28 = arith.addf %25, %27 : vector<5x32xf32>
    %c0_13 = arith.constant 0 : index
    %c0_14 = arith.constant 0 : index
    %c0_15 = arith.constant 0 : index
    %29 = vector.load %arg4[%c0_13, %c0_14, %c0_15] : memref<2x32x384xbf16, #tpu.memory_space<vmem>>, vector<1x32x384xbf16>
    %30 = vector.shape_cast %29 : vector<1x32x384xbf16> to vector<32x384xbf16>
    %cst_16 = arith.constant dense<0.000000e+00> : vector<5xf32>
    %31 = vector.multi_reduction <add>, %28, %cst_16 [1] : vector<5x32xf32> to vector<5xf32>
    %32 = vector.shape_cast %31 : vector<5xf32> to vector<5x1xf32>
    %cst_17 = arith.constant 3.200000e+01 : f32
    %33 = vector.broadcast %cst_17 : f32 to vector<5x1xf32>
    %34 = arith.divf %32, %33 : vector<5x1xf32>
    %35 = vector.broadcast %34 : vector<5x1xf32> to vector<5x32xf32>
    %36 = arith.subf %28, %35 : vector<5x32xf32>
    %37 = arith.mulf %36, %36 : vector<5x32xf32>
    %cst_18 = arith.constant dense<0.000000e+00> : vector<5xf32>
    %38 = vector.multi_reduction <add>, %37, %cst_18 [1] : vector<5x32xf32> to vector<5xf32>
    %39 = vector.shape_cast %38 : vector<5xf32> to vector<5x1xf32>
    %cst_19 = arith.constant 3.200000e+01 : f32
    %40 = vector.broadcast %cst_19 : f32 to vector<5x1xf32>
    %41 = arith.divf %39, %40 : vector<5x1xf32>
    %cst_20 = arith.constant 9.99999974E-6 : f32
    %42 = vector.broadcast %cst_20 : f32 to vector<5x1xf32>
    %43 = arith.addf %41, %42 : vector<5x1xf32>
    %44 = math.rsqrt %43 : vector<5x1xf32>
    %45 = vector.broadcast %44 : vector<5x1xf32> to vector<5x32xf32>
    %46 = arith.mulf %36, %45 : vector<5x32xf32>
    %c9 = arith.constant 9 : index
    %c0_21 = arith.constant 0 : index
    %47 = vector.load %arg3[%c9, %c0_21] : memref<25x128xf32, #tpu.memory_space<vmem>>, vector<1x32xf32>
    %48 = vector.broadcast %47 : vector<1x32xf32> to vector<5x32xf32>
    %49 = arith.mulf %46, %48 : vector<5x32xf32>
    %c10 = arith.constant 10 : index
    %c0_22 = arith.constant 0 : index
    %50 = vector.load %arg3[%c10, %c0_22] : memref<25x128xf32, #tpu.memory_space<vmem>>, vector<1x32xf32>
    %51 = vector.broadcast %50 : vector<1x32xf32> to vector<5x32xf32>
    %52 = arith.addf %49, %51 : vector<5x32xf32>
    %53 = arith.truncf %52 : vector<5x32xf32> to vector<5x32xbf16>
    %54 = vector.extract_strided_slice %30 {offsets = [0, 0], sizes = [32, 96], strides = [1, 1]} : vector<32x384xbf16> to vector<32x96xbf16>
    %cst_23 = arith.constant dense<0.000000e+00> : vector<5x96xf32>
    %55 = tpu.matmul %53, %54, %cst_23 {dimension_numbers = #tpu.dot_dimension_numbers<[1], [0], [0], [1], [0, 0, 1, 1], [], []>} : vector<5x32xbf16>, vector<32x96xbf16>, vector<5x96xf32> -> vector<5x96xf32>
    %c11 = arith.constant 11 : index
    %c0_24 = arith.constant 0 : index
    %56 = vector.load %arg3[%c11, %c0_24] : memref<25x128xf32, #tpu.memory_space<vmem>>, vector<1x96xf32>
    %57 = vector.broadcast %56 : vector<1x96xf32> to vector<5x96xf32>
    %58 = arith.addf %55, %57 : vector<5x96xf32>
    %59 = vector.extract_strided_slice %58 {offsets = [0, 0], sizes = [5, 8], strides = [1, 1]} : vector<5x96xf32> to vector<5x8xf32>
    %60 = vector.extract_strided_slice %58 {offsets = [0, 32], sizes = [5, 8], strides = [1, 1]} : vector<5x96xf32> to vector<5x8xf32>
    %61 = vector.extract_strided_slice %58 {offsets = [0, 64], sizes = [5, 8], strides = [1, 1]} : vector<5x96xf32> to vector<5x8xf32>
    %cst_25 = arith.constant dense<0.000000e+00> : vector<5x5xf32>
    %62 = tpu.matmul %59, %60, %cst_25 {dimension_numbers = #tpu.dot_dimension_numbers<[1], [1], [0], [0], [0, 0, 1, 0], [], []>} : vector<5x8xf32>, vector<5x8xf32>, vector<5x5xf32> -> vector<5x5xf32>
    %cst_26 = arith.constant 0.353553385 : f32
    %63 = vector.broadcast %cst_26 : f32 to vector<5x5xf32>
    %64 = arith.mulf %62, %63 : vector<5x5xf32>
    %cst_27 = arith.constant dense<0xFF800000> : vector<5xf32>
    %65 = vector.multi_reduction <maximumf>, %64, %cst_27 [1] : vector<5x5xf32> to vector<5xf32>
    %66 = vector.shape_cast %65 : vector<5xf32> to vector<5x1xf32>
    %67 = vector.broadcast %66 : vector<5x1xf32> to vector<5x5xf32>
    %68 = arith.subf %64, %67 : vector<5x5xf32>
    %69 = math.exp %68 : vector<5x5xf32>
    %cst_28 = arith.constant dense<0.000000e+00> : vector<5xf32>
    %70 = vector.multi_reduction <add>, %69, %cst_28 [1] : vector<5x5xf32> to vector<5xf32>
    %71 = vector.shape_cast %70 : vector<5xf32> to vector<5x1xf32>
    %72 = tpu.reciprocal %71 {approx = true} : vector<5x1xf32> -> vector<5x1xf32>
    %73 = vector.broadcast %72 : vector<5x1xf32> to vector<5x5xf32>
    %74 = arith.mulf %69, %73 : vector<5x5xf32>
    %cst_29 = arith.constant dense<0.000000e+00> : vector<5x8xf32>
    %75 = tpu.matmul %74, %61, %cst_29 {dimension_numbers = #tpu.dot_dimension_numbers<[1], [0], [0], [1], [0, 0, 1, 1], [], []>} : vector<5x5xf32>, vector<5x8xf32>, vector<5x8xf32> -> vector<5x8xf32>
    %76 = vector.extract_strided_slice %58 {offsets = [0, 8], sizes = [5, 8], strides = [1, 1]} : vector<5x96xf32> to vector<5x8xf32>
    %77 = vector.extract_strided_slice %58 {offsets = [0, 40], sizes = [5, 8], strides = [1, 1]} : vector<5x96xf32> to vector<5x8xf32>
    %78 = vector.extract_strided_slice %58 {offsets = [0, 72], sizes = [5, 8], strides = [1, 1]} : vector<5x96xf32> to vector<5x8xf32>
    %cst_30 = arith.constant dense<0.000000e+00> : vector<5x5xf32>
    %79 = tpu.matmul %76, %77, %cst_30 {dimension_numbers = #tpu.dot_dimension_numbers<[1], [1], [0], [0], [0, 0, 1, 0], [], []>} : vector<5x8xf32>, vector<5x8xf32>, vector<5x5xf32> -> vector<5x5xf32>
    %cst_31 = arith.constant 0.353553385 : f32
    %80 = vector.broadcast %cst_31 : f32 to vector<5x5xf32>
    %81 = arith.mulf %79, %80 : vector<5x5xf32>
    %cst_32 = arith.constant dense<0xFF800000> : vector<5xf32>
    %82 = vector.multi_reduction <maximumf>, %81, %cst_32 [1] : vector<5x5xf32> to vector<5xf32>
    %83 = vector.shape_cast %82 : vector<5xf32> to vector<5x1xf32>
    %84 = vector.broadcast %83 : vector<5x1xf32> to vector<5x5xf32>
    %85 = arith.subf %81, %84 : vector<5x5xf32>
    %86 = math.exp %85 : vector<5x5xf32>
    %cst_33 = arith.constant dense<0.000000e+00> : vector<5xf32>
    %87 = vector.multi_reduction <add>, %86, %cst_33 [1] : vector<5x5xf32> to vector<5xf32>
    %88 = vector.shape_cast %87 : vector<5xf32> to vector<5x1xf32>
    %89 = tpu.reciprocal %88 {approx = true} : vector<5x1xf32> -> vector<5x1xf32>
    %90 = vector.broadcast %89 : vector<5x1xf32> to vector<5x5xf32>
    %91 = arith.mulf %86, %90 : vector<5x5xf32>
    %cst_34 = arith.constant dense<0.000000e+00> : vector<5x8xf32>
    %92 = tpu.matmul %91, %78, %cst_34 {dimension_numbers = #tpu.dot_dimension_numbers<[1], [0], [0], [1], [0, 0, 1, 1], [], []>} : vector<5x5xf32>, vector<5x8xf32>, vector<5x8xf32> -> vector<5x8xf32>
    %93 = vector.extract_strided_slice %58 {offsets = [0, 16], sizes = [5, 8], strides = [1, 1]} : vector<5x96xf32> to vector<5x8xf32>
    %94 = vector.extract_strided_slice %58 {offsets = [0, 48], sizes = [5, 8], strides = [1, 1]} : vector<5x96xf32> to vector<5x8xf32>
    %95 = vector.extract_strided_slice %58 {offsets = [0, 80], sizes = [5, 8], strides = [1, 1]} : vector<5x96xf32> to vector<5x8xf32>
    %cst_35 = arith.constant dense<0.000000e+00> : vector<5x5xf32>
    %96 = tpu.matmul %93, %94, %cst_35 {dimension_numbers = #tpu.dot_dimension_numbers<[1], [1], [0], [0], [0, 0, 1, 0], [], []>} : vector<5x8xf32>, vector<5x8xf32>, vector<5x5xf32> -> vector<5x5xf32>
    %cst_36 = arith.constant 0.353553385 : f32
    %97 = vector.broadcast %cst_36 : f32 to vector<5x5xf32>
    %98 = arith.mulf %96, %97 : vector<5x5xf32>
    %cst_37 = arith.constant dense<0xFF800000> : vector<5xf32>
    %99 = vector.multi_reduction <maximumf>, %98, %cst_37 [1] : vector<5x5xf32> to vector<5xf32>
    %100 = vector.shape_cast %99 : vector<5xf32> to vector<5x1xf32>
    %101 = vector.broadcast %100 : vector<5x1xf32> to vector<5x5xf32>
    %102 = arith.subf %98, %101 : vector<5x5xf32>
    %103 = math.exp %102 : vector<5x5xf32>
    %cst_38 = arith.constant dense<0.000000e+00> : vector<5xf32>
    %104 = vector.multi_reduction <add>, %103, %cst_38 [1] : vector<5x5xf32> to vector<5xf32>
    %105 = vector.shape_cast %104 : vector<5xf32> to vector<5x1xf32>
    %106 = tpu.reciprocal %105 {approx = true} : vector<5x1xf32> -> vector<5x1xf32>
    %107 = vector.broadcast %106 : vector<5x1xf32> to vector<5x5xf32>
    %108 = arith.mulf %103, %107 : vector<5x5xf32>
    %cst_39 = arith.constant dense<0.000000e+00> : vector<5x8xf32>
    %109 = tpu.matmul %108, %95, %cst_39 {dimension_numbers = #tpu.dot_dimension_numbers<[1], [0], [0], [1], [0, 0, 1, 1], [], []>} : vector<5x5xf32>, vector<5x8xf32>, vector<5x8xf32> -> vector<5x8xf32>
    %110 = vector.extract_strided_slice %58 {offsets = [0, 24], sizes = [5, 8], strides = [1, 1]} : vector<5x96xf32> to vector<5x8xf32>
    %111 = vector.extract_strided_slice %58 {offsets = [0, 56], sizes = [5, 8], strides = [1, 1]} : vector<5x96xf32> to vector<5x8xf32>
    %112 = vector.extract_strided_slice %58 {offsets = [0, 88], sizes = [5, 8], strides = [1, 1]} : vector<5x96xf32> to vector<5x8xf32>
    %cst_40 = arith.constant dense<0.000000e+00> : vector<5x5xf32>
    %113 = tpu.matmul %110, %111, %cst_40 {dimension_numbers = #tpu.dot_dimension_numbers<[1], [1], [0], [0], [0, 0, 1, 0], [], []>} : vector<5x8xf32>, vector<5x8xf32>, vector<5x5xf32> -> vector<5x5xf32>
    %cst_41 = arith.constant 0.353553385 : f32
    %114 = vector.broadcast %cst_41 : f32 to vector<5x5xf32>
    %115 = arith.mulf %113, %114 : vector<5x5xf32>
    %cst_42 = arith.constant dense<0xFF800000> : vector<5xf32>
    %116 = vector.multi_reduction <maximumf>, %115, %cst_42 [1] : vector<5x5xf32> to vector<5xf32>
    %117 = vector.shape_cast %116 : vector<5xf32> to vector<5x1xf32>
    %118 = vector.broadcast %117 : vector<5x1xf32> to vector<5x5xf32>
    %119 = arith.subf %115, %118 : vector<5x5xf32>
    %120 = math.exp %119 : vector<5x5xf32>
    %cst_43 = arith.constant dense<0.000000e+00> : vector<5xf32>
    %121 = vector.multi_reduction <add>, %120, %cst_43 [1] : vector<5x5xf32> to vector<5xf32>
    %122 = vector.shape_cast %121 : vector<5xf32> to vector<5x1xf32>
    %123 = tpu.reciprocal %122 {approx = true} : vector<5x1xf32> -> vector<5x1xf32>
    %124 = vector.broadcast %123 : vector<5x1xf32> to vector<5x5xf32>
    %125 = arith.mulf %120, %124 : vector<5x5xf32>
    %cst_44 = arith.constant dense<0.000000e+00> : vector<5x8xf32>
    %126 = tpu.matmul %125, %112, %cst_44 {dimension_numbers = #tpu.dot_dimension_numbers<[1], [0], [0], [1], [0, 0, 1, 1], [], []>} : vector<5x5xf32>, vector<5x8xf32>, vector<5x8xf32> -> vector<5x8xf32>
    %127 = tpu.concatenate %75, %92, %109, %126 in 1 : vector<5x8xf32>, vector<5x8xf32>, vector<5x8xf32>, vector<5x8xf32> -> vector<5x32xf32>
    %128 = arith.truncf %127 : vector<5x32xf32> to vector<5x32xbf16>
    %129 = vector.extract_strided_slice %30 {offsets = [0, 128], sizes = [32, 32], strides = [1, 1]} : vector<32x384xbf16> to vector<32x32xbf16>
    %cst_45 = arith.constant dense<0.000000e+00> : vector<5x32xf32>
    %130 = tpu.matmul %128, %129, %cst_45 {dimension_numbers = #tpu.dot_dimension_numbers<[1], [0], [0], [1], [0, 0, 1, 1], [], []>} : vector<5x32xbf16>, vector<32x32xbf16>, vector<5x32xf32> -> vector<5x32xf32>
    %c12 = arith.constant 12 : index
    %c0_46 = arith.constant 0 : index
    %131 = vector.load %arg3[%c12, %c0_46] : memref<25x128xf32, #tpu.memory_space<vmem>>, vector<1x32xf32>
    %132 = vector.broadcast %131 : vector<1x32xf32> to vector<5x32xf32>
    %133 = arith.addf %130, %132 : vector<5x32xf32>
    %134 = arith.addf %28, %133 : vector<5x32xf32>
    %cst_47 = arith.constant dense<0.000000e+00> : vector<5xf32>
    %135 = vector.multi_reduction <add>, %134, %cst_47 [1] : vector<5x32xf32> to vector<5xf32>
    %136 = vector.shape_cast %135 : vector<5xf32> to vector<5x1xf32>
    %cst_48 = arith.constant 3.200000e+01 : f32
    %137 = vector.broadcast %cst_48 : f32 to vector<5x1xf32>
    %138 = arith.divf %136, %137 : vector<5x1xf32>
    %139 = vector.broadcast %138 : vector<5x1xf32> to vector<5x32xf32>
    %140 = arith.subf %134, %139 : vector<5x32xf32>
    %141 = arith.mulf %140, %140 : vector<5x32xf32>
    %cst_49 = arith.constant dense<0.000000e+00> : vector<5xf32>
    %142 = vector.multi_reduction <add>, %141, %cst_49 [1] : vector<5x32xf32> to vector<5xf32>
    %143 = vector.shape_cast %142 : vector<5xf32> to vector<5x1xf32>
    %cst_50 = arith.constant 3.200000e+01 : f32
    %144 = vector.broadcast %cst_50 : f32 to vector<5x1xf32>
    %145 = arith.divf %143, %144 : vector<5x1xf32>
    %cst_51 = arith.constant 9.99999974E-6 : f32
    %146 = vector.broadcast %cst_51 : f32 to vector<5x1xf32>
    %147 = arith.addf %145, %146 : vector<5x1xf32>
    %148 = math.rsqrt %147 : vector<5x1xf32>
    %149 = vector.broadcast %148 : vector<5x1xf32> to vector<5x32xf32>
    %150 = arith.mulf %140, %149 : vector<5x32xf32>
    %c13 = arith.constant 13 : index
    %c0_52 = arith.constant 0 : index
    %151 = vector.load %arg3[%c13, %c0_52] : memref<25x128xf32, #tpu.memory_space<vmem>>, vector<1x32xf32>
    %152 = vector.broadcast %151 : vector<1x32xf32> to vector<5x32xf32>
    %153 = arith.mulf %150, %152 : vector<5x32xf32>
    %c14 = arith.constant 14 : index
    %c0_53 = arith.constant 0 : index
    %154 = vector.load %arg3[%c14, %c0_53] : memref<25x128xf32, #tpu.memory_space<vmem>>, vector<1x32xf32>
    %155 = vector.broadcast %154 : vector<1x32xf32> to vector<5x32xf32>
    %156 = arith.addf %153, %155 : vector<5x32xf32>
    %157 = arith.truncf %156 : vector<5x32xf32> to vector<5x32xbf16>
    %158 = vector.extract_strided_slice %30 {offsets = [0, 256], sizes = [32, 128], strides = [1, 1]} : vector<32x384xbf16> to vector<32x128xbf16>
    %cst_54 = arith.constant dense<0.000000e+00> : vector<5x128xf32>
    %159 = tpu.matmul %157, %158, %cst_54 {dimension_numbers = #tpu.dot_dimension_numbers<[1], [0], [0], [1], [0, 0, 1, 1], [], []>} : vector<5x32xbf16>, vector<32x128xbf16>, vector<5x128xf32> -> vector<5x128xf32>
    %c15 = arith.constant 15 : index
    %c0_55 = arith.constant 0 : index
    %160 = vector.load %arg3[%c15, %c0_55] : memref<25x128xf32, #tpu.memory_space<vmem>>, vector<1x128xf32>
    %161 = vector.broadcast %160 : vector<1x128xf32> to vector<5x128xf32>
    %162 = arith.addf %159, %161 : vector<5x128xf32>
    %cst_56 = arith.constant 0.707106769 : f32
    %163 = vector.broadcast %cst_56 : f32 to vector<5x128xf32>
    %164 = arith.mulf %162, %163 : vector<5x128xf32>
    %165 = math.absf %164 : vector<5x128xf32>
    %cst_57 = arith.constant 0.327591091 : f32
    %166 = vector.broadcast %cst_57 : f32 to vector<5x128xf32>
    %167 = arith.mulf %166, %165 : vector<5x128xf32>
    %cst_58 = arith.constant 1.000000e+00 : f32
    %168 = vector.broadcast %cst_58 : f32 to vector<5x128xf32>
    %169 = arith.addf %168, %167 : vector<5x128xf32>
    %cst_59 = arith.constant 1.000000e+00 : f32
    %170 = vector.broadcast %cst_59 : f32 to vector<5x128xf32>
    %171 = arith.divf %170, %169 : vector<5x128xf32>
    %cst_60 = arith.constant 1.06140542 : f32
    %172 = vector.broadcast %cst_60 : f32 to vector<5x128xf32>
    %173 = arith.mulf %171, %172 : vector<5x128xf32>
    %cst_61 = arith.constant -1.45315206 : f32
    %174 = vector.broadcast %cst_61 : f32 to vector<5x128xf32>
    %175 = arith.addf %174, %173 : vector<5x128xf32>
    %176 = arith.mulf %171, %175 : vector<5x128xf32>
    %cst_62 = arith.constant 1.42141378 : f32
    %177 = vector.broadcast %cst_62 : f32 to vector<5x128xf32>
    %178 = arith.addf %177, %176 : vector<5x128xf32>
    %179 = arith.mulf %171, %178 : vector<5x128xf32>
    %cst_63 = arith.constant -0.284496725 : f32
    %180 = vector.broadcast %cst_63 : f32 to vector<5x128xf32>
    %181 = arith.addf %180, %179 : vector<5x128xf32>
    %182 = arith.mulf %171, %181 : vector<5x128xf32>
    %cst_64 = arith.constant 0.254829586 : f32
    %183 = vector.broadcast %cst_64 : f32 to vector<5x128xf32>
    %184 = arith.addf %183, %182 : vector<5x128xf32>
    %185 = arith.mulf %171, %184 : vector<5x128xf32>
    %cst_65 = arith.constant 0.000000e+00 : f32
    %186 = vector.broadcast %cst_65 : f32 to vector<5x128xf32>
    %187 = arith.subf %186, %165 : vector<5x128xf32>
    %188 = arith.mulf %187, %165 : vector<5x128xf32>
    %189 = math.exp %188 : vector<5x128xf32>
    %190 = arith.mulf %185, %189 : vector<5x128xf32>
    %cst_66 = arith.constant 1.000000e+00 : f32
    %191 = vector.broadcast %cst_66 : f32 to vector<5x128xf32>
    %192 = arith.subf %191, %190 : vector<5x128xf32>
    %cst_67 = arith.constant 0.000000e+00 : f32
    %193 = vector.broadcast %cst_67 : f32 to vector<5x128xf32>
    %194 = arith.cmpf oge, %164, %193 : vector<5x128xf32>
    %cst_68 = arith.constant 0.000000e+00 : f32
    %195 = vector.broadcast %cst_68 : f32 to vector<5x128xf32>
    %196 = arith.subf %195, %192 : vector<5x128xf32>
    %197 = arith.select %194, %192, %196 : vector<5x128xi1>, vector<5x128xf32>
    %cst_69 = arith.constant 5.000000e-01 : f32
    %198 = vector.broadcast %cst_69 : f32 to vector<5x128xf32>
    %199 = arith.mulf %198, %162 : vector<5x128xf32>
    %cst_70 = arith.constant 1.000000e+00 : f32
    %200 = vector.broadcast %cst_70 : f32 to vector<5x128xf32>
    %201 = arith.addf %200, %197 : vector<5x128xf32>
    %202 = arith.mulf %199, %201 : vector<5x128xf32>
    %203 = arith.truncf %202 : vector<5x128xf32> to vector<5x128xbf16>
    %c0_71 = arith.constant 0 : index
    %c0_72 = arith.constant 0 : index
    %c0_73 = arith.constant 0 : index
    %204 = vector.load %arg5[%c0_71, %c0_72, %c0_73] : memref<2x128x32xbf16, #tpu.memory_space<vmem>>, vector<1x128x32xbf16>
    %205 = vector.shape_cast %204 : vector<1x128x32xbf16> to vector<128x32xbf16>
    %cst_74 = arith.constant dense<0.000000e+00> : vector<5x32xf32>
    %206 = tpu.matmul %203, %205, %cst_74 {dimension_numbers = #tpu.dot_dimension_numbers<[1], [0], [0], [1], [0, 0, 1, 1], [], []>} : vector<5x128xbf16>, vector<128x32xbf16>, vector<5x32xf32> -> vector<5x32xf32>
    %c16 = arith.constant 16 : index
    %c0_75 = arith.constant 0 : index
    %207 = vector.load %arg3[%c16, %c0_75] : memref<25x128xf32, #tpu.memory_space<vmem>>, vector<1x32xf32>
    %208 = vector.broadcast %207 : vector<1x32xf32> to vector<5x32xf32>
    %209 = arith.addf %206, %208 : vector<5x32xf32>
    %210 = arith.addf %134, %209 : vector<5x32xf32>
    %c1 = arith.constant 1 : index
    %c0_76 = arith.constant 0 : index
    %c0_77 = arith.constant 0 : index
    %211 = vector.load %arg4[%c1, %c0_76, %c0_77] : memref<2x32x384xbf16, #tpu.memory_space<vmem>>, vector<1x32x384xbf16>
    %212 = vector.shape_cast %211 : vector<1x32x384xbf16> to vector<32x384xbf16>
    %cst_78 = arith.constant dense<0.000000e+00> : vector<5xf32>
    %213 = vector.multi_reduction <add>, %210, %cst_78 [1] : vector<5x32xf32> to vector<5xf32>
    %214 = vector.shape_cast %213 : vector<5xf32> to vector<5x1xf32>
    %cst_79 = arith.constant 3.200000e+01 : f32
    %215 = vector.broadcast %cst_79 : f32 to vector<5x1xf32>
    %216 = arith.divf %214, %215 : vector<5x1xf32>
    %217 = vector.broadcast %216 : vector<5x1xf32> to vector<5x32xf32>
    %218 = arith.subf %210, %217 : vector<5x32xf32>
    %219 = arith.mulf %218, %218 : vector<5x32xf32>
    %cst_80 = arith.constant dense<0.000000e+00> : vector<5xf32>
    %220 = vector.multi_reduction <add>, %219, %cst_80 [1] : vector<5x32xf32> to vector<5xf32>
    %221 = vector.shape_cast %220 : vector<5xf32> to vector<5x1xf32>
    %cst_81 = arith.constant 3.200000e+01 : f32
    %222 = vector.broadcast %cst_81 : f32 to vector<5x1xf32>
    %223 = arith.divf %221, %222 : vector<5x1xf32>
    %cst_82 = arith.constant 9.99999974E-6 : f32
    %224 = vector.broadcast %cst_82 : f32 to vector<5x1xf32>
    %225 = arith.addf %223, %224 : vector<5x1xf32>
    %226 = math.rsqrt %225 : vector<5x1xf32>
    %227 = vector.broadcast %226 : vector<5x1xf32> to vector<5x32xf32>
    %228 = arith.mulf %218, %227 : vector<5x32xf32>
    %c17 = arith.constant 17 : index
    %c0_83 = arith.constant 0 : index
    %229 = vector.load %arg3[%c17, %c0_83] : memref<25x128xf32, #tpu.memory_space<vmem>>, vector<1x32xf32>
    %230 = vector.broadcast %229 : vector<1x32xf32> to vector<5x32xf32>
    %231 = arith.mulf %228, %230 : vector<5x32xf32>
    %c18 = arith.constant 18 : index
    %c0_84 = arith.constant 0 : index
    %232 = vector.load %arg3[%c18, %c0_84] : memref<25x128xf32, #tpu.memory_space<vmem>>, vector<1x32xf32>
    %233 = vector.broadcast %232 : vector<1x32xf32> to vector<5x32xf32>
    %234 = arith.addf %231, %233 : vector<5x32xf32>
    %235 = arith.truncf %234 : vector<5x32xf32> to vector<5x32xbf16>
    %236 = vector.extract_strided_slice %212 {offsets = [0, 0], sizes = [32, 96], strides = [1, 1]} : vector<32x384xbf16> to vector<32x96xbf16>
    %cst_85 = arith.constant dense<0.000000e+00> : vector<5x96xf32>
    %237 = tpu.matmul %235, %236, %cst_85 {dimension_numbers = #tpu.dot_dimension_numbers<[1], [0], [0], [1], [0, 0, 1, 1], [], []>} : vector<5x32xbf16>, vector<32x96xbf16>, vector<5x96xf32> -> vector<5x96xf32>
    %c19 = arith.constant 19 : index
    %c0_86 = arith.constant 0 : index
    %238 = vector.load %arg3[%c19, %c0_86] : memref<25x128xf32, #tpu.memory_space<vmem>>, vector<1x96xf32>
    %239 = vector.broadcast %238 : vector<1x96xf32> to vector<5x96xf32>
    %240 = arith.addf %237, %239 : vector<5x96xf32>
    %241 = vector.extract_strided_slice %240 {offsets = [0, 0], sizes = [5, 8], strides = [1, 1]} : vector<5x96xf32> to vector<5x8xf32>
    %242 = vector.extract_strided_slice %240 {offsets = [0, 32], sizes = [5, 8], strides = [1, 1]} : vector<5x96xf32> to vector<5x8xf32>
    %243 = vector.extract_strided_slice %240 {offsets = [0, 64], sizes = [5, 8], strides = [1, 1]} : vector<5x96xf32> to vector<5x8xf32>
    %cst_87 = arith.constant dense<0.000000e+00> : vector<5x5xf32>
    %244 = tpu.matmul %241, %242, %cst_87 {dimension_numbers = #tpu.dot_dimension_numbers<[1], [1], [0], [0], [0, 0, 1, 0], [], []>} : vector<5x8xf32>, vector<5x8xf32>, vector<5x5xf32> -> vector<5x5xf32>
    %cst_88 = arith.constant 0.353553385 : f32
    %245 = vector.broadcast %cst_88 : f32 to vector<5x5xf32>
    %246 = arith.mulf %244, %245 : vector<5x5xf32>
    %cst_89 = arith.constant dense<0xFF800000> : vector<5xf32>
    %247 = vector.multi_reduction <maximumf>, %246, %cst_89 [1] : vector<5x5xf32> to vector<5xf32>
    %248 = vector.shape_cast %247 : vector<5xf32> to vector<5x1xf32>
    %249 = vector.broadcast %248 : vector<5x1xf32> to vector<5x5xf32>
    %250 = arith.subf %246, %249 : vector<5x5xf32>
    %251 = math.exp %250 : vector<5x5xf32>
    %cst_90 = arith.constant dense<0.000000e+00> : vector<5xf32>
    %252 = vector.multi_reduction <add>, %251, %cst_90 [1] : vector<5x5xf32> to vector<5xf32>
    %253 = vector.shape_cast %252 : vector<5xf32> to vector<5x1xf32>
    %254 = tpu.reciprocal %253 {approx = true} : vector<5x1xf32> -> vector<5x1xf32>
    %255 = vector.broadcast %254 : vector<5x1xf32> to vector<5x5xf32>
    %256 = arith.mulf %251, %255 : vector<5x5xf32>
    %cst_91 = arith.constant dense<0.000000e+00> : vector<5x8xf32>
    %257 = tpu.matmul %256, %243, %cst_91 {dimension_numbers = #tpu.dot_dimension_numbers<[1], [0], [0], [1], [0, 0, 1, 1], [], []>} : vector<5x5xf32>, vector<5x8xf32>, vector<5x8xf32> -> vector<5x8xf32>
    %258 = vector.extract_strided_slice %240 {offsets = [0, 8], sizes = [5, 8], strides = [1, 1]} : vector<5x96xf32> to vector<5x8xf32>
    %259 = vector.extract_strided_slice %240 {offsets = [0, 40], sizes = [5, 8], strides = [1, 1]} : vector<5x96xf32> to vector<5x8xf32>
    %260 = vector.extract_strided_slice %240 {offsets = [0, 72], sizes = [5, 8], strides = [1, 1]} : vector<5x96xf32> to vector<5x8xf32>
    %cst_92 = arith.constant dense<0.000000e+00> : vector<5x5xf32>
    %261 = tpu.matmul %258, %259, %cst_92 {dimension_numbers = #tpu.dot_dimension_numbers<[1], [1], [0], [0], [0, 0, 1, 0], [], []>} : vector<5x8xf32>, vector<5x8xf32>, vector<5x5xf32> -> vector<5x5xf32>
    %cst_93 = arith.constant 0.353553385 : f32
    %262 = vector.broadcast %cst_93 : f32 to vector<5x5xf32>
    %263 = arith.mulf %261, %262 : vector<5x5xf32>
    %cst_94 = arith.constant dense<0xFF800000> : vector<5xf32>
    %264 = vector.multi_reduction <maximumf>, %263, %cst_94 [1] : vector<5x5xf32> to vector<5xf32>
    %265 = vector.shape_cast %264 : vector<5xf32> to vector<5x1xf32>
    %266 = vector.broadcast %265 : vector<5x1xf32> to vector<5x5xf32>
    %267 = arith.subf %263, %266 : vector<5x5xf32>
    %268 = math.exp %267 : vector<5x5xf32>
    %cst_95 = arith.constant dense<0.000000e+00> : vector<5xf32>
    %269 = vector.multi_reduction <add>, %268, %cst_95 [1] : vector<5x5xf32> to vector<5xf32>
    %270 = vector.shape_cast %269 : vector<5xf32> to vector<5x1xf32>
    %271 = tpu.reciprocal %270 {approx = true} : vector<5x1xf32> -> vector<5x1xf32>
    %272 = vector.broadcast %271 : vector<5x1xf32> to vector<5x5xf32>
    %273 = arith.mulf %268, %272 : vector<5x5xf32>
    %cst_96 = arith.constant dense<0.000000e+00> : vector<5x8xf32>
    %274 = tpu.matmul %273, %260, %cst_96 {dimension_numbers = #tpu.dot_dimension_numbers<[1], [0], [0], [1], [0, 0, 1, 1], [], []>} : vector<5x5xf32>, vector<5x8xf32>, vector<5x8xf32> -> vector<5x8xf32>
    %275 = vector.extract_strided_slice %240 {offsets = [0, 16], sizes = [5, 8], strides = [1, 1]} : vector<5x96xf32> to vector<5x8xf32>
    %276 = vector.extract_strided_slice %240 {offsets = [0, 48], sizes = [5, 8], strides = [1, 1]} : vector<5x96xf32> to vector<5x8xf32>
    %277 = vector.extract_strided_slice %240 {offsets = [0, 80], sizes = [5, 8], strides = [1, 1]} : vector<5x96xf32> to vector<5x8xf32>
    %cst_97 = arith.constant dense<0.000000e+00> : vector<5x5xf32>
    %278 = tpu.matmul %275, %276, %cst_97 {dimension_numbers = #tpu.dot_dimension_numbers<[1], [1], [0], [0], [0, 0, 1, 0], [], []>} : vector<5x8xf32>, vector<5x8xf32>, vector<5x5xf32> -> vector<5x5xf32>
    %cst_98 = arith.constant 0.353553385 : f32
    %279 = vector.broadcast %cst_98 : f32 to vector<5x5xf32>
    %280 = arith.mulf %278, %279 : vector<5x5xf32>
    %cst_99 = arith.constant dense<0xFF800000> : vector<5xf32>
    %281 = vector.multi_reduction <maximumf>, %280, %cst_99 [1] : vector<5x5xf32> to vector<5xf32>
    %282 = vector.shape_cast %281 : vector<5xf32> to vector<5x1xf32>
    %283 = vector.broadcast %282 : vector<5x1xf32> to vector<5x5xf32>
    %284 = arith.subf %280, %283 : vector<5x5xf32>
    %285 = math.exp %284 : vector<5x5xf32>
    %cst_100 = arith.constant dense<0.000000e+00> : vector<5xf32>
    %286 = vector.multi_reduction <add>, %285, %cst_100 [1] : vector<5x5xf32> to vector<5xf32>
    %287 = vector.shape_cast %286 : vector<5xf32> to vector<5x1xf32>
    %288 = tpu.reciprocal %287 {approx = true} : vector<5x1xf32> -> vector<5x1xf32>
    %289 = vector.broadcast %288 : vector<5x1xf32> to vector<5x5xf32>
    %290 = arith.mulf %285, %289 : vector<5x5xf32>
    %cst_101 = arith.constant dense<0.000000e+00> : vector<5x8xf32>
    %291 = tpu.matmul %290, %277, %cst_101 {dimension_numbers = #tpu.dot_dimension_numbers<[1], [0], [0], [1], [0, 0, 1, 1], [], []>} : vector<5x5xf32>, vector<5x8xf32>, vector<5x8xf32> -> vector<5x8xf32>
    %292 = vector.extract_strided_slice %240 {offsets = [0, 24], sizes = [5, 8], strides = [1, 1]} : vector<5x96xf32> to vector<5x8xf32>
    %293 = vector.extract_strided_slice %240 {offsets = [0, 56], sizes = [5, 8], strides = [1, 1]} : vector<5x96xf32> to vector<5x8xf32>
    %294 = vector.extract_strided_slice %240 {offsets = [0, 88], sizes = [5, 8], strides = [1, 1]} : vector<5x96xf32> to vector<5x8xf32>
    %cst_102 = arith.constant dense<0.000000e+00> : vector<5x5xf32>
    %295 = tpu.matmul %292, %293, %cst_102 {dimension_numbers = #tpu.dot_dimension_numbers<[1], [1], [0], [0], [0, 0, 1, 0], [], []>} : vector<5x8xf32>, vector<5x8xf32>, vector<5x5xf32> -> vector<5x5xf32>
    %cst_103 = arith.constant 0.353553385 : f32
    %296 = vector.broadcast %cst_103 : f32 to vector<5x5xf32>
    %297 = arith.mulf %295, %296 : vector<5x5xf32>
    %cst_104 = arith.constant dense<0xFF800000> : vector<5xf32>
    %298 = vector.multi_reduction <maximumf>, %297, %cst_104 [1] : vector<5x5xf32> to vector<5xf32>
    %299 = vector.shape_cast %298 : vector<5xf32> to vector<5x1xf32>
    %300 = vector.broadcast %299 : vector<5x1xf32> to vector<5x5xf32>
    %301 = arith.subf %297, %300 : vector<5x5xf32>
    %302 = math.exp %301 : vector<5x5xf32>
    %cst_105 = arith.constant dense<0.000000e+00> : vector<5xf32>
    %303 = vector.multi_reduction <add>, %302, %cst_105 [1] : vector<5x5xf32> to vector<5xf32>
    %304 = vector.shape_cast %303 : vector<5xf32> to vector<5x1xf32>
    %305 = tpu.reciprocal %304 {approx = true} : vector<5x1xf32> -> vector<5x1xf32>
    %306 = vector.broadcast %305 : vector<5x1xf32> to vector<5x5xf32>
    %307 = arith.mulf %302, %306 : vector<5x5xf32>
    %cst_106 = arith.constant dense<0.000000e+00> : vector<5x8xf32>
    %308 = tpu.matmul %307, %294, %cst_106 {dimension_numbers = #tpu.dot_dimension_numbers<[1], [0], [0], [1], [0, 0, 1, 1], [], []>} : vector<5x5xf32>, vector<5x8xf32>, vector<5x8xf32> -> vector<5x8xf32>
    %309 = tpu.concatenate %257, %274, %291, %308 in 1 : vector<5x8xf32>, vector<5x8xf32>, vector<5x8xf32>, vector<5x8xf32> -> vector<5x32xf32>
    %310 = arith.truncf %309 : vector<5x32xf32> to vector<5x32xbf16>
    %311 = vector.extract_strided_slice %212 {offsets = [0, 128], sizes = [32, 32], strides = [1, 1]} : vector<32x384xbf16> to vector<32x32xbf16>
    %cst_107 = arith.constant dense<0.000000e+00> : vector<5x32xf32>
    %312 = tpu.matmul %310, %311, %cst_107 {dimension_numbers = #tpu.dot_dimension_numbers<[1], [0], [0], [1], [0, 0, 1, 1], [], []>} : vector<5x32xbf16>, vector<32x32xbf16>, vector<5x32xf32> -> vector<5x32xf32>
    %c20 = arith.constant 20 : index
    %c0_108 = arith.constant 0 : index
    %313 = vector.load %arg3[%c20, %c0_108] : memref<25x128xf32, #tpu.memory_space<vmem>>, vector<1x32xf32>
    %314 = vector.broadcast %313 : vector<1x32xf32> to vector<5x32xf32>
    %315 = arith.addf %312, %314 : vector<5x32xf32>
    %316 = arith.addf %210, %315 : vector<5x32xf32>
    %cst_109 = arith.constant dense<0.000000e+00> : vector<5xf32>
    %317 = vector.multi_reduction <add>, %316, %cst_109 [1] : vector<5x32xf32> to vector<5xf32>
    %318 = vector.shape_cast %317 : vector<5xf32> to vector<5x1xf32>
    %cst_110 = arith.constant 3.200000e+01 : f32
    %319 = vector.broadcast %cst_110 : f32 to vector<5x1xf32>
    %320 = arith.divf %318, %319 : vector<5x1xf32>
    %321 = vector.broadcast %320 : vector<5x1xf32> to vector<5x32xf32>
    %322 = arith.subf %316, %321 : vector<5x32xf32>
    %323 = arith.mulf %322, %322 : vector<5x32xf32>
    %cst_111 = arith.constant dense<0.000000e+00> : vector<5xf32>
    %324 = vector.multi_reduction <add>, %323, %cst_111 [1] : vector<5x32xf32> to vector<5xf32>
    %325 = vector.shape_cast %324 : vector<5xf32> to vector<5x1xf32>
    %cst_112 = arith.constant 3.200000e+01 : f32
    %326 = vector.broadcast %cst_112 : f32 to vector<5x1xf32>
    %327 = arith.divf %325, %326 : vector<5x1xf32>
    %cst_113 = arith.constant 9.99999974E-6 : f32
    %328 = vector.broadcast %cst_113 : f32 to vector<5x1xf32>
    %329 = arith.addf %327, %328 : vector<5x1xf32>
    %330 = math.rsqrt %329 : vector<5x1xf32>
    %331 = vector.broadcast %330 : vector<5x1xf32> to vector<5x32xf32>
    %332 = arith.mulf %322, %331 : vector<5x32xf32>
    %c21 = arith.constant 21 : index
    %c0_114 = arith.constant 0 : index
    %333 = vector.load %arg3[%c21, %c0_114] : memref<25x128xf32, #tpu.memory_space<vmem>>, vector<1x32xf32>
    %334 = vector.broadcast %333 : vector<1x32xf32> to vector<5x32xf32>
    %335 = arith.mulf %332, %334 : vector<5x32xf32>
    %c22 = arith.constant 22 : index
    %c0_115 = arith.constant 0 : index
    %336 = vector.load %arg3[%c22, %c0_115] : memref<25x128xf32, #tpu.memory_space<vmem>>, vector<1x32xf32>
    %337 = vector.broadcast %336 : vector<1x32xf32> to vector<5x32xf32>
    %338 = arith.addf %335, %337 : vector<5x32xf32>
    %339 = arith.truncf %338 : vector<5x32xf32> to vector<5x32xbf16>
    %340 = vector.extract_strided_slice %212 {offsets = [0, 256], sizes = [32, 128], strides = [1, 1]} : vector<32x384xbf16> to vector<32x128xbf16>
    %cst_116 = arith.constant dense<0.000000e+00> : vector<5x128xf32>
    %341 = tpu.matmul %339, %340, %cst_116 {dimension_numbers = #tpu.dot_dimension_numbers<[1], [0], [0], [1], [0, 0, 1, 1], [], []>} : vector<5x32xbf16>, vector<32x128xbf16>, vector<5x128xf32> -> vector<5x128xf32>
    %c23 = arith.constant 23 : index
    %c0_117 = arith.constant 0 : index
    %342 = vector.load %arg3[%c23, %c0_117] : memref<25x128xf32, #tpu.memory_space<vmem>>, vector<1x128xf32>
    %343 = vector.broadcast %342 : vector<1x128xf32> to vector<5x128xf32>
    %344 = arith.addf %341, %343 : vector<5x128xf32>
    %cst_118 = arith.constant 0.707106769 : f32
    %345 = vector.broadcast %cst_118 : f32 to vector<5x128xf32>
    %346 = arith.mulf %344, %345 : vector<5x128xf32>
    %347 = math.absf %346 : vector<5x128xf32>
    %cst_119 = arith.constant 0.327591091 : f32
    %348 = vector.broadcast %cst_119 : f32 to vector<5x128xf32>
    %349 = arith.mulf %348, %347 : vector<5x128xf32>
    %cst_120 = arith.constant 1.000000e+00 : f32
    %350 = vector.broadcast %cst_120 : f32 to vector<5x128xf32>
    %351 = arith.addf %350, %349 : vector<5x128xf32>
    %cst_121 = arith.constant 1.000000e+00 : f32
    %352 = vector.broadcast %cst_121 : f32 to vector<5x128xf32>
    %353 = arith.divf %352, %351 : vector<5x128xf32>
    %cst_122 = arith.constant 1.06140542 : f32
    %354 = vector.broadcast %cst_122 : f32 to vector<5x128xf32>
    %355 = arith.mulf %353, %354 : vector<5x128xf32>
    %cst_123 = arith.constant -1.45315206 : f32
    %356 = vector.broadcast %cst_123 : f32 to vector<5x128xf32>
    %357 = arith.addf %356, %355 : vector<5x128xf32>
    %358 = arith.mulf %353, %357 : vector<5x128xf32>
    %cst_124 = arith.constant 1.42141378 : f32
    %359 = vector.broadcast %cst_124 : f32 to vector<5x128xf32>
    %360 = arith.addf %359, %358 : vector<5x128xf32>
    %361 = arith.mulf %353, %360 : vector<5x128xf32>
    %cst_125 = arith.constant -0.284496725 : f32
    %362 = vector.broadcast %cst_125 : f32 to vector<5x128xf32>
    %363 = arith.addf %362, %361 : vector<5x128xf32>
    %364 = arith.mulf %353, %363 : vector<5x128xf32>
    %cst_126 = arith.constant 0.254829586 : f32
    %365 = vector.broadcast %cst_126 : f32 to vector<5x128xf32>
    %366 = arith.addf %365, %364 : vector<5x128xf32>
    %367 = arith.mulf %353, %366 : vector<5x128xf32>
    %cst_127 = arith.constant 0.000000e+00 : f32
    %368 = vector.broadcast %cst_127 : f32 to vector<5x128xf32>
    %369 = arith.subf %368, %347 : vector<5x128xf32>
    %370 = arith.mulf %369, %347 : vector<5x128xf32>
    %371 = math.exp %370 : vector<5x128xf32>
    %372 = arith.mulf %367, %371 : vector<5x128xf32>
    %cst_128 = arith.constant 1.000000e+00 : f32
    %373 = vector.broadcast %cst_128 : f32 to vector<5x128xf32>
    %374 = arith.subf %373, %372 : vector<5x128xf32>
    %cst_129 = arith.constant 0.000000e+00 : f32
    %375 = vector.broadcast %cst_129 : f32 to vector<5x128xf32>
    %376 = arith.cmpf oge, %346, %375 : vector<5x128xf32>
    %cst_130 = arith.constant 0.000000e+00 : f32
    %377 = vector.broadcast %cst_130 : f32 to vector<5x128xf32>
    %378 = arith.subf %377, %374 : vector<5x128xf32>
    %379 = arith.select %376, %374, %378 : vector<5x128xi1>, vector<5x128xf32>
    %cst_131 = arith.constant 5.000000e-01 : f32
    %380 = vector.broadcast %cst_131 : f32 to vector<5x128xf32>
    %381 = arith.mulf %380, %344 : vector<5x128xf32>
    %cst_132 = arith.constant 1.000000e+00 : f32
    %382 = vector.broadcast %cst_132 : f32 to vector<5x128xf32>
    %383 = arith.addf %382, %379 : vector<5x128xf32>
    %384 = arith.mulf %381, %383 : vector<5x128xf32>
    %385 = arith.truncf %384 : vector<5x128xf32> to vector<5x128xbf16>
    %c1_133 = arith.constant 1 : index
    %c0_134 = arith.constant 0 : index
    %c0_135 = arith.constant 0 : index
    %386 = vector.load %arg5[%c1_133, %c0_134, %c0_135] : memref<2x128x32xbf16, #tpu.memory_space<vmem>>, vector<1x128x32xbf16>
    %387 = vector.shape_cast %386 : vector<1x128x32xbf16> to vector<128x32xbf16>
    %cst_136 = arith.constant dense<0.000000e+00> : vector<5x32xf32>
    %388 = tpu.matmul %385, %387, %cst_136 {dimension_numbers = #tpu.dot_dimension_numbers<[1], [0], [0], [1], [0, 0, 1, 1], [], []>} : vector<5x128xbf16>, vector<128x32xbf16>, vector<5x32xf32> -> vector<5x32xf32>
    %c24 = arith.constant 24 : index
    %c0_137 = arith.constant 0 : index
    %389 = vector.load %arg3[%c24, %c0_137] : memref<25x128xf32, #tpu.memory_space<vmem>>, vector<1x32xf32>
    %390 = vector.broadcast %389 : vector<1x32xf32> to vector<5x32xf32>
    %391 = arith.addf %388, %390 : vector<5x32xf32>
    %392 = arith.addf %316, %391 : vector<5x32xf32>
    %393 = vector.extract_strided_slice %392 {offsets = [0, 0], sizes = [1, 32], strides = [1, 1]} : vector<5x32xf32> to vector<1x32xf32>
    %cst_138 = arith.constant dense<0.000000e+00> : vector<1xf32>
    %394 = vector.multi_reduction <add>, %393, %cst_138 [1] : vector<1x32xf32> to vector<1xf32>
    %395 = vector.shape_cast %394 : vector<1xf32> to vector<1x1xf32>
    %cst_139 = arith.constant 3.200000e+01 : f32
    %396 = vector.broadcast %cst_139 : f32 to vector<1x1xf32>
    %397 = arith.divf %395, %396 : vector<1x1xf32>
    %398 = vector.broadcast %397 : vector<1x1xf32> to vector<1x32xf32>
    %399 = arith.subf %393, %398 : vector<1x32xf32>
    %400 = arith.mulf %399, %399 : vector<1x32xf32>
    %cst_140 = arith.constant dense<0.000000e+00> : vector<1xf32>
    %401 = vector.multi_reduction <add>, %400, %cst_140 [1] : vector<1x32xf32> to vector<1xf32>
    %402 = vector.shape_cast %401 : vector<1xf32> to vector<1x1xf32>
    %cst_141 = arith.constant 3.200000e+01 : f32
    %403 = vector.broadcast %cst_141 : f32 to vector<1x1xf32>
    %404 = arith.divf %402, %403 : vector<1x1xf32>
    %cst_142 = arith.constant 9.99999974E-6 : f32
    %405 = vector.broadcast %cst_142 : f32 to vector<1x1xf32>
    %406 = arith.addf %404, %405 : vector<1x1xf32>
    %407 = math.rsqrt %406 : vector<1x1xf32>
    %408 = vector.broadcast %407 : vector<1x1xf32> to vector<1x32xf32>
    %409 = arith.mulf %399, %408 : vector<1x32xf32>
    %c7 = arith.constant 7 : index
    %c0_143 = arith.constant 0 : index
    %410 = vector.load %arg3[%c7, %c0_143] : memref<25x128xf32, #tpu.memory_space<vmem>>, vector<1x32xf32>
    %411 = arith.mulf %409, %410 : vector<1x32xf32>
    %c8 = arith.constant 8 : index
    %c0_144 = arith.constant 0 : index
    %412 = vector.load %arg3[%c8, %c0_144] : memref<25x128xf32, #tpu.memory_space<vmem>>, vector<1x32xf32>
    %413 = arith.addf %411, %412 : vector<1x32xf32>
    %414 = arith.truncf %413 : vector<1x32xf32> to vector<1x32xbf16>
    %c0_145 = arith.constant 0 : index
    %c0_146 = arith.constant 0 : index
    %415 = vector.load %arg6[%c0_145, %c0_146] : memref<32x16xbf16, #tpu.memory_space<vmem>>, vector<32x16xbf16>
    %cst_147 = arith.constant dense<0.000000e+00> : vector<1x16xf32>
    %416 = tpu.matmul %414, %415, %cst_147 {dimension_numbers = #tpu.dot_dimension_numbers<[1], [0], [0], [1], [0, 0, 1, 1], [], []>} : vector<1x32xbf16>, vector<32x16xbf16>, vector<1x16xf32> -> vector<1x16xf32>
    %417 = arith.mulf %416, %416 : vector<1x16xf32>
    %cst_148 = arith.constant dense<0.000000e+00> : vector<1xf32>
    %418 = vector.multi_reduction <add>, %417, %cst_148 [1] : vector<1x16xf32> to vector<1xf32>
    %419 = vector.shape_cast %418 : vector<1xf32> to vector<1x1xf32>
    %cst_149 = arith.constant 1.000000e-24 : f32
    %420 = vector.broadcast %cst_149 : f32 to vector<1x1xf32>
    %421 = arith.maximumf %419, %420 : vector<1x1xf32>
    %422 = math.rsqrt %421 : vector<1x1xf32>
    %423 = vector.broadcast %422 : vector<1x1xf32> to vector<1x16xf32>
    %424 = arith.mulf %416, %423 : vector<1x16xf32>
    %c0_150 = arith.constant 0 : index
    %c0_151 = arith.constant 0 : index
    %c0_152 = arith.constant 0 : index
    %425 = vector.load %arg7[%c0_150, %c0_151, %c0_152] : memref<1x1x16xf32, #tpu.memory_space<vmem>>, vector<1x1x16xf32>
    %426 = vector.shape_cast %425 : vector<1x1x16xf32> to vector<1x16xf32>
    %427 = vector.shape_cast %424 : vector<1x16xf32> to vector<1x1x16xf32>
    tpu.vector_store %arg7[%c0_150, %c0_151, %c0_152], %427 {strides = array<i32>} : memref<1x1x16xf32, #tpu.memory_space<vmem>>, vector<1x1x16xf32>,
    return
  }
  func.func @transform_0(%arg0: i32) -> (i32, i32, i32) {
    %c0_i32 = arith.constant 0 : i32
    %c0_i32_0 = arith.constant 0 : i32
    %c0_i32_1 = arith.constant 0 : i32
    return %arg0, %c0_i32, %c0_i32_0 : i32, i32, i32
  }
  func.func @transform_1(%arg0: i32) -> (i32, i32) {
    %c0_i32 = arith.constant 0 : i32
    %c0_i32_0 = arith.constant 0 : i32
    %c0_i32_1 = arith.constant 0 : i32
    return %c0_i32, %c0_i32_0 : i32, i32
  }
  func.func @transform_2(%arg0: i32) -> (i32, i32) {
    %c0_i32 = arith.constant 0 : i32
    %c0_i32_0 = arith.constant 0 : i32
    %c0_i32_1 = arith.constant 0 : i32
    return %c0_i32, %c0_i32_0 : i32, i32
  }
  func.func @transform_3(%arg0: i32) -> (i32, i32, i32) {
    %c0_i32 = arith.constant 0 : i32
    %c0_i32_0 = arith.constant 0 : i32
    %c0_i32_1 = arith.constant 0 : i32
    %c0_i32_2 = arith.constant 0 : i32
    return %c0_i32, %c0_i32_0, %c0_i32_1 : i32, i32, i32
  }
  func.func @transform_4(%arg0: i32) -> (i32, i32, i32) {
    %c0_i32 = arith.constant 0 : i32
    %c0_i32_0 = arith.constant 0 : i32
    %c0_i32_1 = arith.constant 0 : i32
    %c0_i32_2 = arith.constant 0 : i32
    return %c0_i32, %c0_i32_0, %c0_i32_1 : i32, i32, i32
  }
  func.func @transform_5(%arg0: i32) -> (i32, i32) {
    %c0_i32 = arith.constant 0 : i32
    %c0_i32_0 = arith.constant 0 : i32
    %c0_i32_1 = arith.constant 0 : i32
    return %c0_i32, %c0_i32_0 : i32, i32
  }
  func.func @transform_6(%arg0: i32) -> (i32, i32, i32) {
    %c0_i32 = arith.constant 0 : i32
    %c0_i32_0 = arith.constant 0 : i32
    %c0_i32_1 = arith.constant 0 : i32
    return %arg0, %c0_i32, %c0_i32_0 : i32, i32, i32
  }
}

</mosaic_0001>

<bundles_post_ra>
// kernel: tpu_custom_call.1
= control target key start
LH: loop header
LB: loop body
LE: loop exit
PB: predicated region body
PF: predicated region fallthrough
CT: control target
= control target key end

     0   :  { %11 = vsyncpa [#allocation3], 0  ;;  %s3900_s0 = inlined_call_operand.vmem [shape: f32[2,5,192], index: 0, kind: input, shape index: {}]   ;;  %s3901_s1 = inlined_call_operand.vmem [shape: bf16[192,32], index: 1, kind: input, shape index: {}]   ;;  %s3902_s2 = inlined_call_operand.vmem [shape: f32[25,128], index: 2, kind: input, shape index: {}]   ;;  %s3903_s3 = inlined_call_operand.vmem [shape: bf16[2,32,384], index: 3, kind: input, shape index: {}]   ;;  %s3904_s4 = inlined_call_operand.vmem [shape: bf16[2,128,32], index: 4, kind: input, shape index: {}]   ;;  %s3905_s5 = inlined_call_operand.vmem [shape: bf16[32,16], index: 5, kind: input, shape index: {}]   ;;  %s3906_s6 = inlined_call_operand.hbm [shape: f32[2,1,16], index: 6, kind: output, shape index: {}]  }
   0x1   :  { %13 = vsyncpa [#allocation3 + $0x1], 0  ;;  %s3356_s21 = smov 0   ;;  %s3358_s22 = smov 0  }
   0x2   :  { %s3360_s23 = smov 0   ;;  %s3362_s24 = smov 0  }
   0x3 LB: > { %s3377_s25 = sadd.s32 4294967295, %s3301_s24   ;;  %s2702_s26 = sadd.s32 4294967294, %s3301_s24   ;;  %s3301_s24 = sphi %s3362_s24, %s3924_s24   ;;  %s3297_s23 = sphi %s3360_s23, %s3923_s23   ;;  %s3293_s22 = sphi %s3358_s22, %s3922_s22   ;;  %s3289_s21 = sphi %s3356_s21, %s3921_s21  }
   0x4   : > { %s3381_s27 = sadd.s32 1, %s3301_s24   ;;  %s157_s28 = sadd.s32 1, %s3297_s23 }
   0x5   : > { %s154_s29 = ssub.s32 %s3301_s24, %s3381_s27  ;;  %p167_p0 = scmp.ne.s32.totalorder %s3297_s23, %s3293_s22 }
   0x6   : > { %p155_p1 = scmp.eq.s32.totalorder %s154_s29, 0  ;;  %p168_p2 = scmp.eq.s32.totalorder %s3377_s25, 1 }
   0x7   : > { %p173_p3 = scmp.ne.s32.totalorder %s3293_s22, %s3289_s21  ;;  %p174_p4 = scmp.eq.s32.totalorder %s2702_s26, 1 }
   0x8   : > { %s3392_s30 = scalar_select %p155_p1, %s3297_s23, %s157_s28  }
   0x9   : > { %p3394_p5 = por %p168_p2, %p167_p0  ;;  %p3398_p6 = por %p174_p4, %p173_p3 }
   0xa   : > { %p2705_p7 = scmp.ge.s32.totalorder %s3301_s24, 1  ;;  %p215_p8 = scmp.lt.s32.totalorder %s3301_s24, 3 }
   0xc   : > { %p216_p9 = pnand %p2705_p7, %p215_p8 }
   0xd   : > { %v3139_v0 = vld [vmem:[%s3901_s1] sm:$0xff] (!%p216_p9)   ;;  %v3303_v1 = vmov (!%p216_p9), 0   ;;  %p244_p10 = scmp.lt.s32.totalorder (!%p216_p9), %s3377_s25, 1  ;;  %v3140_v2 = vld [vmem:[%s3901_s1 + $0x8] sm:$0xff] (!%p216_p9)   ;;  %v3141_v3 = vld [vmem:[%s3901_s1 + $0x10] sm:$0xff] (!%p216_p9)   ;;  %vm351_vm0 = vcmask (!%p216_p9), 523264  }
   0xe   : > { %219 = sbr.rel (%p216_p9) target bundleno = 8986 (0x231a), region = 44  ;;  %355 = vmatprep.subr.bf16.mxu0 (!%p216_p9), %v3303_v1  ;;  %v3142_v4 = vld [vmem:[%s3901_s1 + $0x18] sm:$0xff] (!%p216_p9)   ;;  %v3143_v5 = vld [vmem:[%s3901_s1 + $0x20] sm:$0xff] (!%p216_p9)   ;;  %v3144_v8 = vld [vmem:[%s3901_s1 + $0x28] sm:$0xff] (!%p216_p9)   ;;  %vm395_vm1 = vcmask (!%p216_p9), 258048   ;;  %v3304_v45 = vmov (!%p216_p9), 0.0  }
   0xf   : > { %356 = vmatpush1.bf16.msra.mxu0 (!%p216_p9), %v3139_v0  ;;  %v3145_v9 = vld [vmem:[%s3901_s1 + $0x30] sm:$0xff] (!%p216_p9)   ;;  %v3146_v10 = vld [vmem:[%s3901_s1 + $0x38] sm:$0xff] (!%p216_p9)   ;;  %v3147_v11 = vld [vmem:[%s3901_s1 + $0x40] sm:$0xff] (!%p216_p9)   ;;  %2915 = vmatprep.subr.mxu1 (!%p216_p9), %v3304_v45  ;;  %vm3305_vm2 = vmmov (!%p216_p9), 0   ;;  %vm473_vm3 = vcmask (!%p216_p9), 261120   ;;  %s3306_s10 = smov (!%p216_p9), 96  }
  0x10   : > { %357 = vmatprep.subr.bf16.mxu0 (!%p216_p9), %v3303_v1  ;;  %v3148_v12 = vld [vmem:[%s3901_s1 + $0x48] sm:$0xff] (!%p216_p9)   ;;  %v3149_v13 = vld [vmem:[%s3901_s1 + $0x50] sm:$0xff] (!%p216_p9)   ;;  %v3150_v14 = vld [vmem:[%s3901_s1 + $0x58] sm:$0xff] (!%p216_p9)   ;;  %2917 = vmatprep.mubr.msk.f32.mxu1 (!%p216_p9), %vm3305_vm2, %v3304_v45  ;;  %vm520_vm4 = vcmask (!%p216_p9), 64512   ;;  %vm596_vm5 = vcmask (!%p216_p9), 36864   ;;  %s3308_s11 = smov (!%p216_p9), 64  }
  0x11   : > { %v250_v17 = vld [vmem:[%s3902_s2] sm:$0x1f] (!%p216_p9)  ;;  %v2721_v33 = vld [vmem:[%s3902_s2 + $0x5] ss:$0 sm:$0xff] (!%p216_p9)  ;;  %v2722_v35 = vld [vmem:[%s3902_s2 + $0x6] ss:$0 sm:$0xff] (!%p216_p9) }
  0x12   : > { %v3151_v44 = vld [vmem:[%s3903_s3] ss:$12 sps:$4 sm:$0xff] (!%p216_p9)   ;;  %v3153_v46 = vld [vmem:[%s3903_s3 + $0x18] ss:$12 sps:$4 sm:$0xff] (!%p216_p9)   ;;  %v2723_v51 = vld [vmem:[%s3902_s2 + $0x9] ss:$0 sm:$0xff] (!%p216_p9) }
  0x13   : > { %358 = vmatpush1.bf16.msra.mxu0 (!%p216_p9), %v3140_v2  ;;  %v2724_v53 = vld [vmem:[%s3902_s2 + $0xa] ss:$0 sm:$0xff] (!%p216_p9)  ;;  %v2725_v57 = vld [vmem:[%s3902_s2 + $0xb] ss:$0 sm:$0xff] (!%p216_p9)  ;;  %vm614_vm6 = vcmask (!%p216_p9), 1044480   ;;  %s3309_s12 = smov (!%p216_p9), 120  }
  0x14   : > { %359 = vmatprep.subr.bf16.mxu0 (!%p216_p9), %v3303_v1  ;;  %vm610_vm7 = vcmask (!%p216_p9), 39936   ;;  %s3311_s14 = smov (!%p216_p9), 112   ;;  %s3312_s15 = smov (!%p216_p9), 80   ;;  %vm1201_vm8 = vcmask (!%p216_p9), 130048   ;;  %vm1203_vm9 = vcmask (!%p216_p9), 195584   ;;  %vm2547_vm12 = vcmask (!%p216_p9), 253952  }
  0x15   : > { %s245_s13 = scalar_select %p244_p10, %s3377_s25, 1  ;;  %vm2626_vm13 = vcmask 122880  }
  0x16   : > { %s3314_s17 = smov 104   ;;  %s3911_s18 = smov 48  }
  0x17   : > { %s2835_s16 = sshll.u32 %s245_s13, 4  ;;  %360 = vmatpush1.bf16.msra.mxu0 %v3141_v3  ;;  %s3310_s13 = smov 56  }
  0x18   : > { %s3418_s19 = scalar_lea.vmem %s3900_s0, %s2835_s16  ;;  %361 = vmatprep.subr.bf16.mxu0 %v3303_v1  ;;  %s3912_s16 = smov 72  }
  0x19   : > { %v252_v6 = vld [vmem:[%s3418_s19 + $0x8] sm:$0x1f]  ;;  %v251_v15 = vld [vmem:[%s3418_s19] sm:$0x1f]  ;;  %s3307_s19 = smov 88   ;;  %s3908_s20 = smov 40  }
  0x1a   : > { %v254_v7 = vpack.c.bf16 %v252_v6, %v252_v6  ;;  %v253_v16 = vpack.c.bf16 %v251_v15, %v251_v15  ;;  %s3907_s26 = smov 16   ;;  %s3909_s28 = smov 8  }
  0x1b   : > { %362 = vmatpush1.bf16.msra.mxu0 %v3142_v4 }
  0x1c   : > { %363 = vmatprep.subr.bf16.mxu0 %v3303_v1  ;;  %2720 = vmatprep.mubr.msk.bf16.mxu0 %vm351_vm0, %v254_v7 }
  0x1f   : > { %364 = vmatpush1.bf16.msra.mxu0 %v3143_v5 }
  0x20   : > { %365 = vmatprep.subr.bf16.mxu0 %v3303_v1 }
  0x23   : > { %366 = vmatpush1.bf16.msra.mxu0 %v3144_v8 }
  0x24   : > { %367 = vmatprep.subr.bf16.mxu0 %v3303_v1 }
  0x27   : > { %368 = vmatpush1.bf16.msra.mxu0 %v3145_v9 }
  0x28   : > { %369 = vmatprep.subr.bf16.mxu0 %v3303_v1 }
  0x2b   : > { %370 = vmatpush1.bf16.msra.mxu0 %v3146_v10 }
  0x2c   : > { %371 = vmatprep.subr.bf16.mxu0 %v3303_v1 }
  0x2f   : > { %372 = vmatpush1.bf16.msra.mxu0 %v3147_v11 }
  0x30   : > { %373 = vmatprep.subr.bf16.mxu0 %v3303_v1 }
  0x33   : > { %374 = vmatpush1.bf16.msra.mxu0 %v3148_v12 }
  0x34   : > { %375 = vmatprep.subr.bf16.mxu0 %v3303_v1 }
  0x37   : > { %376 = vmatpush1.bf16.msra.mxu0 %v3149_v13 }
  0x38   : > { %377 = vmatprep.subr.bf16.mxu0 %v3303_v1 }
  0x3b   : > { %378 = vmatpush1.bf16.msra.mxu0 %v3150_v14 }
  0x3c   : > { %2907 = vmatprep.subr.bf16.mxu0 %v3304_v45 }
  0x3e   : > { %388 = vmatmul.mubr.bf16.vlgmr.msra.gmra.mrb[0].mxu0 %v253_v16 }
  0x3f   : > { %2908 = vmatpush3.bf16.msra.mxu0 %v3151_v44  ;;  %2911 = vmatprep.mubr.msk.bf16.mxu0 %vm3305_vm2, %v3304_v45 }
  0x40   : > { %2909 = vmatprep.subr.bf16.mxu0 %v3304_v45 }
  0x43   : > { %2910 = vmatpush3.bf16.msra.mxu0 %v3153_v46 }
  0x44   : > { %2963 = vmatprep.subr.bf16.mxu0 %v3304_v45 }
 0x111   : > { %v389_v18 = vpop.f32.mrb[0].mxu0 }
 0x112   : > { %v390_v19 = vadd.f32 %v389_v18, %v250_v17  ;;  %v391_v20 = vpop.f32.mrb[1].mxu0 }
 0x113   : > { %v392_v21 = vpop.f32.mrb[2].mxu0 }
 0x114   : > { %v393_v22 = vpop.f32.mrb[3].mxu0  ;;  %v396_v23 = vsel %vm395_vm1, %v390_v19, 0.0 }
 0x115   : > { %397 = vadd.xlane.f32.xlu0 %v396_v23 }
 0x1a2   : > { %v398_v24 = vpop.xlane.xlu0 %397 }
 0x1a3   : > { %v400_v25 = vmul.f32 0.03125, %v398_v24 }
 0x1a5   : > { %v401_v26 = vsub.f32 %v390_v19, %v400_v25 }
 0x1a7   : > { %v402_v27 = vmul.f32 %v401_v26, %v401_v26 }
 0x1a9   : > { %v403_v28 = vsel %vm395_vm1, %v402_v27, 0.0 }
 0x1aa   : > { %404 = vadd.xlane.f32.xlu0 %v403_v28 }
 0x237   : > { %v405_v29 = vpop.xlane.xlu0 %404 }
 0x238   : > { %v406_v30 = vmul.f32 0.03125, %v405_v29 }
 0x23a   : > { %v407_v31 = vadd.f32 1e-05, %v406_v30 }
 0x23c   : > { %3185 = vrsqrt.f32 %v407_v31 }
 0x246   : > { %v3186_v32 = vpop.eup %3185 }
 0x247   : > { %v409_v34 = vmul.f32 %v3186_v32, %v401_v26 }
 0x249   : > { %v415_v36 = vmul.f32 %v2721_v33, %v409_v34 }
 0x24b   : > { %v3460_v37 = vadd.f32 %v2722_v35, %v415_v36 }
 0x24d   : > { %v430_v38 = vsel %vm395_vm1, %v3460_v37, 0.0 }
 0x24e   : > { %431 = vadd.xlane.f32.xlu1 %v430_v38 }
 0x2db   : > { %v432_v39 = vpop.xlane.xlu1 %431 }
 0x2dc   : > { %v433_v40 = vmul.f32 0.03125, %v432_v39 }
 0x2de   : > { %v434_v41 = vsub.f32 %v3460_v37, %v433_v40 }
 0x2e0   : > { %v435_v42 = vmul.f32 %v434_v41, %v434_v41 }
 0x2e2   : > { %v436_v43 = vsel %vm395_vm1, %v435_v42, 0.0 }
 0x2e3   : > { %437 = vadd.xlane.f32.xlu1 %v436_v43 }
 0x370   : > { %v438_v47 = vpop.xlane.xlu1 %437 }
 0x371   : > { %v439_v48 = vmul.f32 0.03125, %v438_v47 }
 0x373   : > { %v440_v49 = vadd.f32 1e-05, %v439_v48 }
 0x375   : > { %3187 = vrsqrt.f32 %v440_v49 }
 0x37f   : > { %v3188_v50 = vpop.eup %3187 }
 0x380   : > { %v442_v52 = vmul.f32 %v3188_v50, %v434_v41 }
 0x382   : > { %v448_v54 = vmul.f32 %v2723_v51, %v442_v52 }
 0x384   : > { %v454_v55 = vadd.f32 %v2724_v53, %v448_v54 }
 0x386   : > { %v455_v56 = vpack.c.bf16 %v454_v55, %v454_v55 }
 0x388   : > { %2912 = vmatmul.mubr.msk.bf16.vlgmr.msra.gmra.mrb[4].mxu0 %vm473_vm3, %v455_v56 }
 0x389   : > { %2967 = vmatprep.mubr.msk.bf16.mxu0 %vm3305_vm2, %v3304_v45 }
 0x45b   : > { %v511_v58 = vpop.f32.mrb[4].mxu0 }
 0x45c   : > { %v3492_v59 = vadd.f32 %v2725_v57, %v511_v58  ;;  %v2913_v60 = vpop.f32.mrb[5].mxu0 }
 0x45d   : > { %v514_v61 = vpop.f32.mrb[6].mxu0 }
 0x45e   : > { %518 = vrot.lane.b32.xlu0 %v3492_v59, %s3306_s10  ;;  %v2914_v62 = vpop.f32.mrb[7].mxu0 }
 0x462   : > { %689 = vrot.lane.b32.xlu0 %v3492_v59, %s3307_s19 }
 0x4d0   : > { %v519_v63 = vpop.permute.xlu0 %518 }
 0x4d1   : > { %2916 = vmatpush3.xpose.msk.msra.mxu1 %vm520_vm4, %v519_v63 }
 0x4d2   : > { %2920 = vmatprep.subr.mxu1 %v3304_v45 }
 0x4d4   : > { %2918 = vmatmul.mubr.msk.f32.vlgmr.msra.gmra.mrb[0].mxu1 %vm520_vm4, %v3492_v59  ;;  %v690_v13 = vpop.permute.xlu0 %689 }
 0x4d5   : > { %2922 = vmatprep.mubr.msk.f32.mxu1 %vm3305_vm2, %v3304_v45 }
 0x5a7   : > { %v591_v0 = vpop.f32.mrb[0].mxu1 }
 0x5a8   : > { %v595_v1 = vmul.f32 0.35355338, %v591_v0  ;;  %v2919_v2 = vpop.f32.mrb[1].mxu1 }
 0x5a9   : > { %v3155_v2 = vld [vmem:[%s3903_s3 + $0x4] ss:$12 sps:$4 sm:$0xff]  }
 0x5aa   : > { %v597_v3 = vsel %vm596_vm5, %v595_v1, -inf }
 0x5ab   : > { %598 = vmax.xlane.f32.xlu1 %v597_v3  ;;  %v3156_v3 = vld [vmem:[%s3903_s3 + $0x1c] ss:$12 sps:$4 sm:$0xff]  }
 0x5bc   : > { %608 = vrot.lane.b32.xlu1 %v3492_v59, %s3308_s11 }
 0x638   : > { %v599_v4 = vpop.xlane.xlu1 %598 }
 0x639   : > { %v600_v5 = vsub.f32 %v595_v1, %v599_v4 }
 0x63b   : > { %v601_v6 = vmul.f32 1.442695, %v600_v5 }
 0x63c   : > { %v609_v7 = vpop.permute.xlu1 %608 }
 0x63d   : > { %3189 = vpow2.f32 %v601_v6  ;;  %2921 = vmatpush3.msk.msra.mxu1 %vm614_vm6, %v609_v7 }
 0x63e   : > { %2925 = vmatprep.subr.mxu1 %v3304_v45 }
 0x647   : > { %v3190_v8 = vpop.eup %3189 }
 0x648   : > { %v603_v9 = vsel %vm596_vm5, %v3190_v8, 0.0 }
 0x649   : > { %604 = vadd.xlane.f32.xlu1 %v603_v9 }
 0x65a   : > { %687 = vrot.lane.b32.xlu1 %v3492_v59, %s3309_s12 }
 0x6d6   : > { %v605_v10 = vpop.xlane.xlu1 %604 }
 0x6d7   : > { %3191 = vrcp.f32 %v605_v10 }
 0x6da   : > { %v688_v14 = vpop.permute.xlu1 %687 }
 0x6e1   : > { %v3192_v11 = vpop.eup %3191 }
 0x6e2   : > { %v607_v12 = vmul.f32 %v3192_v11, %v3190_v8 }
 0x6e4   : > { %2923 = vmatmul.mubr.msk.f32.vlgmr.msra.gmra.mrb[2].mxu1 %vm610_vm7, %v607_v12 }
 0x6e5   : > { %2926 = vmatpush3.xpose.msk.msra.mxu1 %vm520_vm4, %v690_v13  ;;  %2927 = vmatprep.mubr.msk.f32.mxu1 %vm3305_vm2, %v3304_v45  ;;  %v2745_v13 = vld [vmem:[%s3902_s2 + $0xc] ss:$0 sm:$0xff] }
 0x6e6   : > { %2930 = vmatprep.subr.mxu1 %v3304_v45 }
 0x6e8   : > { %2928 = vmatmul.mubr.msk.f32.vlgmr.msra.gmra.mrb[4].mxu1 %vm520_vm4, %v688_v14 }
 0x6e9   : > { %2932 = vmatprep.mubr.msk.f32.mxu1 %vm3305_vm2, %v3304_v45 }
 0x7b7   : > { %v3520_v15 = vpop.f32.mrb[2].mxu1 }
 0x7b8   : > { %v2924_v16 = vpop.f32.mrb[3].mxu1 }
 0x7bb   : > { %v761_v17 = vpop.f32.mrb[4].mxu1 }
 0x7bc   : > { %v765_v18 = vmul.f32 0.35355338, %v761_v17  ;;  %v2929_v19 = vpop.f32.mrb[5].mxu1 }
 0x7be   : > { %v766_v20 = vsel %vm596_vm5, %v765_v18, -inf }
 0x7bf   : > { %767 = vmax.xlane.f32.xlu0 %v766_v20 }
 0x7d5   : > { %777 = vrot.lane.b32.xlu0 %v3492_v59, %s3310_s13 }
 0x7d9   : > { %854 = vrot.lane.b32.xlu0 %v3492_v59, %s3311_s14 }
 0x84c   : > { %v768_v21 = vpop.xlane.xlu0 %767 }
 0x84d   : > { %v769_v22 = vsub.f32 %v765_v18, %v768_v21 }
 0x84f   : > { %v770_v23 = vmul.f32 1.442695, %v769_v22 }
 0x850   : > { %v778_v24 = vpop.permute.xlu0 %777 }
 0x851   : > { %3193 = vpow2.f32 %v770_v23  ;;  %2931 = vmatpush3.msk.msra.mxu1 %vm614_vm6, %v778_v24 }
 0x852   : > { %2935 = vmatprep.subr.mxu1 %v3304_v45 }
 0x854   : > { %v855_v31 = vpop.permute.xlu0 %854 }
 0x85b   : > { %v3194_v25 = vpop.eup %3193 }
 0x85c   : > { %v772_v26 = vsel %vm596_vm5, %v3194_v25, 0.0 }
 0x85d   : > { %773 = vadd.xlane.f32.xlu1 %v772_v26  ;;  %v3157_v26 = vld [vmem:[%s3903_s3 + $0x8] ss:$12 sps:$4 sm:$0xff]  }
 0x85e   : > { %2964 = vmatpush3.bf16.msra.mxu0 %v3157_v26 }
 0x85f   : > { %2965 = vmatprep.subr.bf16.mxu0 %v3304_v45 }
 0x86e   : > { %856 = vrot.lane.b32.xlu1 %v3492_v59, %s3312_s15 }
 0x8ea   : > { %v774_v27 = vpop.xlane.xlu1 %773 }
 0x8eb   : > { %3195 = vrcp.f32 %v774_v27 }
 0x8ee   : > { %v857_v30 = vpop.permute.xlu1 %856 }
 0x8f5   : > { %v3196_v28 = vpop.eup %3195 }
 0x8f6   : > { %v776_v29 = vmul.f32 %v3196_v28, %v3194_v25 }
 0x8f8   : > { %2933 = vmatmul.mubr.msk.f32.vlgmr.msra.gmra.mrb[6].mxu1 %vm610_vm7, %v776_v29 }
 0x8f9   : > { %2936 = vmatpush3.xpose.msk.msra.mxu1 %vm520_vm4, %v857_v30  ;;  %2937 = vmatprep.mubr.msk.f32.mxu1 %vm3305_vm2, %v3304_v45 }
 0x8fa   : > { %2940 = vmatprep.subr.mxu1 %v3304_v45 }
 0x8fc   : > { %2938 = vmatmul.mubr.msk.f32.vlgmr.msra.gmra.mrb[8].mxu1 %vm520_vm4, %v855_v31  ;;  %v2749_v31 = vld [vmem:[%s3902_s2 + $0xd] ss:$0 sm:$0xff] }
 0x8fd   : > { %2942 = vmatprep.mubr.msk.f32.mxu1 %vm3305_vm2, %v3304_v45 }
 0x9cb   : > { %v850_v32 = vpop.f32.mrb[6].mxu1 }
 0x9cc   : > { %v2934_v33 = vpop.f32.mrb[7].mxu1 }
 0x9cd   : > { %v2750_v33 = vld [vmem:[%s3902_s2 + $0xe] ss:$0 sm:$0xff] }
 0x9cf   : > { %v928_v34 = vpop.f32.mrb[8].mxu1 }
 0x9d0   : > { %v932_v35 = vmul.f32 0.35355338, %v928_v34  ;;  %v2939_v36 = vpop.f32.mrb[9].mxu1 }
 0x9d2   : > { %v933_v38 = vsel %vm596_vm5, %v932_v35, -inf }
 0x9d3   : > { %934 = vmax.xlane.f32.xlu1 %v933_v38  ;;  %v3159_v38 = vld [vmem:[%s3904_s4] sm:$0xff]  }
 0x9e4   : > { %1023 = vrot.lane.b32.xlu1 %v3492_v59, %s3912_s16 }
 0x9e8   : > { %1021 = vrot.lane.b32.xlu1 %v3492_v59, %s3314_s17 }
 0xa60   : > { %v935_v39 = vpop.xlane.xlu1 %934 }
 0xa61   : > { %v936_v40 = vsub.f32 %v932_v35, %v935_v39  ;;  %v3160_v39 = vld [vmem:[%s3904_s4 + $0x8] sm:$0xff]  }
 0xa63   : > { %v937_v41 = vmul.f32 1.442695, %v936_v40  ;;  %v3161_v40 = vld [vmem:[%s3904_s4 + $0x10] sm:$0xff]  }
 0xa64   : > { %v1024_v48 = vpop.permute.xlu1 %1023 }
 0xa65   : > { %3197 = vpow2.f32 %v937_v41  ;;  %v3162_v41 = vld [vmem:[%s3904_s4 + $0x18] sm:$0xff]  }
 0xa68   : > { %v1022_v50 = vpop.permute.xlu1 %1021 }
 0xa6f   : > { %v3198_v42 = vpop.eup %3197 }
 0xa70   : > { %v939_v43 = vsel %vm596_vm5, %v3198_v42, 0.0 }
 0xa71   : > { %940 = vadd.xlane.f32.xlu0 %v939_v43  ;;  %v3164_v43 = vld [vmem:[%s3904_s4 + $0x28] sm:$0xff]  }
 0xa87   : > { %944 = vrot.lane.b32.xlu0 %v3492_v59, %s3911_s18  ;;  %s3919_s18 = smov 16  }
 0xafe   : > { %v941_v44 = vpop.xlane.xlu0 %940 }
 0xaff   : > { %3199 = vrcp.f32 %v941_v44  ;;  %v3165_v44 = vld [vmem:[%s3904_s4 + $0x30] sm:$0xff]  }
 0xb02   : > { %v945_v46 = vpop.permute.xlu0 %944 }
 0xb03   : > { %2941 = vmatpush3.msk.msra.mxu1 %vm614_vm6, %v945_v46  ;;  %v3166_v46 = vld [vmem:[%s3904_s4 + $0x38] sm:$0xff]  }
 0xb04   : > { %2945 = vmatprep.subr.mxu1 %v3304_v45 }
 0xb09   : > { %v3200_v47 = vpop.eup %3199 }
 0xb0a   : > { %v943_v49 = vmul.f32 %v3200_v47, %v3198_v42  ;;  %v3163_v42 = vld [vmem:[%s3904_s4 + $0x20] sm:$0xff]   ;;  %v2751_v47 = vld [vmem:[%s3902_s2 + $0xf] ss:$0 sm:$0xff] }
 0xb0c   : > { %2943 = vmatmul.mubr.msk.f32.vlgmr.msra.gmra.mrb[10].mxu1 %vm610_vm7, %v943_v49 }
 0xb0d   : > { %2946 = vmatpush3.xpose.msk.msra.mxu1 %vm520_vm4, %v1024_v48  ;;  %2947 = vmatprep.mubr.msk.f32.mxu1 %vm3305_vm2, %v3304_v45 }
 0xb0e   : > { %2950 = vmatprep.subr.mxu1 %v3304_v45 }
 0xb10   : > { %2948 = vmatmul.mubr.msk.f32.vlgmr.msra.gmra.mrb[12].mxu1 %vm520_vm4, %v1022_v50 }
 0xb11   : > { %2952 = vmatprep.mubr.msk.f32.mxu1 %vm3305_vm2, %v3304_v45 }
 0xbdf   : > { %v1017_v51 = vpop.f32.mrb[10].mxu1 }
 0xbe0   : > { %v2944_v52 = vpop.f32.mrb[11].mxu1 }
 0xbe3   : > { %v1095_v53 = vpop.f32.mrb[12].mxu1 }
 0xbe4   : > { %v1099_v54 = vmul.f32 0.35355338, %v1095_v53  ;;  %v2949_v55 = vpop.f32.mrb[13].mxu1 }
 0xbe6   : > { %v1100_v56 = vsel %vm596_vm5, %v1099_v54, -inf }
 0xbe7   : > { %1101 = vmax.xlane.f32.xlu0 %v1100_v56 }
 0xbfd   : > { %1111 = vrot.lane.b32.xlu0 %v3492_v59, %s3908_s20 }
 0xc01   : > { %1193 = vrot.lane.b32.xlu0 %v1017_v51, %s3907_s26 }
 0xc74   : > { %v1102_v57 = vpop.xlane.xlu0 %1101 }
 0xc75   : > { %v1103_v58 = vsub.f32 %v1099_v54, %v1102_v57 }
 0xc77   : > { %v1104_v60 = vmul.f32 1.442695, %v1103_v58 }
 0xc78   : > { %v1112_v61 = vpop.permute.xlu0 %1111 }
 0xc79   : > { %3201 = vpow2.f32 %v1104_v60  ;;  %2951 = vmatpush3.msk.msra.mxu1 %vm614_vm6, %v1112_v61 }
 0xc7a   : > { %2955 = vmatprep.subr.bf16.mxu1 %v3304_v45 }
 0xc7c   : > { %v1194_v8 = vpop.permute.xlu0 %1193 }
 0xc83   : > { %v3202_v62 = vpop.eup %3201 }
 0xc84   : > { %v1106_v63 = vsel %vm596_vm5, %v3202_v62, 0.0 }
 0xc85   : > { %1107 = vadd.xlane.f32.xlu1 %v1106_v63 }
 0xc96   : > { %1189 = vrot.lane.b32.xlu1 %v850_v32, %s3909_s28  ;;  %s3910_s28 = smov 24  }
 0xd12   : > { %v1108_v59 = vpop.xlane.xlu1 %1107 }
 0xd13   : > { %3203 = vrcp.f32 %v1108_v59 }
 0xd16   : > { %v1190_v6 = vpop.permute.xlu1 %1189 }
 0xd17   : > { %v1200_v7 = vsel %vm520_vm4, %v3520_v15, %v1190_v6 }
 0xd18   : > { %v1202_v9 = vsel %vm1201_vm8, %v1200_v7, %v1194_v8 }
 0xd1d   : > { %v3204_v0 = vpop.eup %3203 }
 0xd1e   : > { %v1110_v1 = vmul.f32 %v3204_v0, %v3202_v62 }
 0xd20   : > { %2953 = vmatmul.mubr.msk.f32.vlgmr.msra.gmra.mrb[14].mxu1 %vm610_vm7, %v1110_v1 }
 0xd21   : > { %2959 = vmatprep.mubr.msk.bf16.mxu1 %vm3305_vm2, %v3304_v45  ;;  %2956 = vmatpush3.bf16.msra.mxu1 %v3155_v2 }
 0xd22   : > { %2957 = vmatprep.subr.bf16.mxu1 %v3304_v45 }
 0xd25   : > { %2958 = vmatpush3.bf16.msra.mxu1 %v3156_v3 }
 0xd26   : > { %2971 = vmatprep.subr.bf16.mxu1 %v3304_v45 }
 0xdf3   : > { %v1184_v4 = vpop.f32.mrb[14].mxu1 }
 0xdf4   : > { %1197 = vrot.lane.b32.xlu1 %v1184_v4, %s3910_s28  ;;  %v2954_v5 = vpop.f32.mrb[15].mxu1  ;;  %s3920_s28 = smov 24  }
 0xe66   : > { %v1198_v10 = vpop.permute.xlu1 %1197 }
 0xe67   : > { %v1204_v11 = vsel %vm1203_vm9, %v1202_v9, %v1198_v10 }
 0xe68   : > { %v1205_v12 = vpack.c.bf16 %v1204_v11, %v1204_v11 }
 0xe6a   : > { %2960 = vmatmul.mubr.msk.bf16.vlgmr.msra.gmra.mrb[16].mxu1 %vm473_vm3, %v1205_v12 }
 0xe6b   : > { %2987 = vmatprep.mubr.msk.bf16.mxu1 %vm3305_vm2, %v3304_v45  ;;  %2972 = vmatpush3.bf16.msra.mxu1 %v3159_v38 }
 0xe6c   : > { %2973 = vmatprep.subr.bf16.mxu1 %v3304_v45 }
 0xe6f   : > { %2974 = vmatpush3.bf16.msra.mxu1 %v3160_v39 }
 0xe70   : > { %2975 = vmatprep.subr.bf16.mxu1 %v3304_v45 }
 0xe73   : > { %2976 = vmatpush3.bf16.msra.mxu1 %v3161_v40  ;;  %v2774_v40 = vld [vmem:[%s3902_s2 + $0x13] ss:$0 sm:$0xff] }
 0xe74   : > { %2977 = vmatprep.subr.bf16.mxu1 %v3304_v45 }
 0xe77   : > { %2978 = vmatpush3.bf16.msra.mxu1 %v3162_v41 }
 0xe78   : > { %2979 = vmatprep.subr.bf16.mxu1 %v3304_v45 }
 0xe7b   : > { %2980 = vmatpush3.bf16.msra.mxu1 %v3163_v42 }
 0xe7c   : > { %2981 = vmatprep.subr.bf16.mxu1 %v3304_v45 }
 0xe7f   : > { %2982 = vmatpush3.bf16.msra.mxu1 %v3164_v43 }
 0xe80   : > { %2983 = vmatprep.subr.bf16.mxu1 %v3304_v45 }
 0xe83   : > { %2984 = vmatpush3.bf16.msra.mxu1 %v3165_v44 }
 0xe84   : > { %2985 = vmatprep.subr.bf16.mxu1 %v3304_v45 }
 0xe87   : > { %2986 = vmatpush3.bf16.msra.mxu1 %v3166_v46 }
 0xe88   : > { %3029 = vmatprep.subr.mxu1 %v3304_v45 }
 0xf3d   : > { %v1256_v14 = vpop.f32.mrb[16].mxu1 }
 0xf3e   : > { %v1257_v15 = vadd.f32 %v2745_v13, %v1256_v14  ;;  %v2961_v16 = vpop.f32.mrb[17].mxu1 }
 0xf3f   : > { %v1259_v17 = vpop.f32.mrb[18].mxu1 }
 0xf40   : > { %v3589_v18 = vadd.f32 %v1257_v15, %v3460_v37  ;;  %v2962_v19 = vpop.f32.mrb[19].mxu1  ;;  %v3158_v37 = vld [vmem:[%s3903_s3 + $0x20] ss:$12 sps:$4 sm:$0xff]   ;;  %v2755_v15 = vld [vmem:[%s3902_s2 + $0x10] ss:$0 sm:$0xff] }
 0xf41   : > { %2966 = vmatpush3.bf16.msra.mxu0 %v3158_v37 }
 0xf42   : > { %v1263_v20 = vsel %vm395_vm1, %v3589_v18, 0.0  ;;  %2991 = vmatprep.subr.bf16.mxu0 %v3304_v45 }
 0xf43   : > { %1264 = vadd.xlane.f32.xlu0 %v1263_v20 }
 0xfd0   : > { %v1265_v21 = vpop.xlane.xlu0 %1264 }
 0xfd1   : > { %v1266_v22 = vmul.f32 0.03125, %v1265_v21 }
 0xfd3   : > { %v1267_v23 = vsub.f32 %v3589_v18, %v1266_v22 }
 0xfd5   : > { %v1268_v24 = vmul.f32 %v1267_v23, %v1267_v23 }
 0xfd7   : > { %v1269_v25 = vsel %vm395_vm1, %v1268_v24, 0.0 }
 0xfd8   : > { %1270 = vadd.xlane.f32.xlu1 %v1269_v25 }
0x1065   : > { %v1271_v27 = vpop.xlane.xlu1 %1270 }
0x1066   : > { %v1272_v28 = vmul.f32 0.03125, %v1271_v27 }
0x1068   : > { %v1273_v29 = vadd.f32 1e-05, %v1272_v28  ;;  %v3167_v28 = vld [vmem:[%s3903_s3 + $0x30] ss:$12 sps:$4 sm:$0xff]  }
0x106a   : > { %3205 = vrsqrt.f32 %v1273_v29 }
0x1074   : > { %v3206_v30 = vpop.eup %3205 }
0x1075   : > { %v1275_v32 = vmul.f32 %v3206_v30, %v1267_v23 }
0x1077   : > { %v1281_v34 = vmul.f32 %v2749_v31, %v1275_v32 }
0x1079   : > { %v1287_v35 = vadd.f32 %v2750_v33, %v1281_v34  ;;  %v2772_v33 = vld [vmem:[%s3902_s2 + $0x11] ss:$0 sm:$0xff] }
0x107b   : > { %v1288_v36 = vpack.c.bf16 %v1287_v35, %v1287_v35  ;;  %v2773_v35 = vld [vmem:[%s3902_s2 + $0x12] ss:$0 sm:$0xff] }
0x107d   : > { %2968 = vmatmul.mubr.msk.bf16.vlgmr.msra.gmra.mrb[8].mxu0 %vm473_vm3, %v1288_v36 }
0x107e   : > { %2995 = vmatprep.mubr.msk.bf16.mxu0 %vm3305_vm2, %v3304_v45  ;;  %2992 = vmatpush3.bf16.msra.mxu0 %v3167_v28 }
0x107f   : > { %2993 = vmatprep.subr.bf16.mxu0 %v3304_v45 }
0x1150   : > { %v1343_v48 = vpop.f32.mrb[8].mxu0 }
0x1151   : > { %v1344_v49 = vadd.f32 %v2751_v47, %v1343_v48  ;;  %v2969_v50 = vpop.f32.mrb[9].mxu0 }
0x1152   : > { %v1346_v51 = vpop.f32.mrb[10].mxu0 }
0x1153   : > { %v1349_v52 = vmul.f32 0.70710677, %v1344_v49  ;;  %v2970_v53 = vpop.f32.mrb[11].mxu0  ;;  %v1373_v11 = vmul.f32 0.5, %v1344_v49 }
0x1155   : > { %v1350_v54 = vand.u32 2147483647, %v1349_v52  ;;  %vm1370_vm10 = vcmp.ge.f32.partialorder %v1349_v52, 0.0 }
0x1157   : > { %v1351_v55 = vmul.f32 0.3275911, %v1350_v54  ;;  %v1364_v57 = vsub.f32 0.0, %v1350_v54 }
0x1159   : > { %v1352_v56 = vadd.f32 1.0, %v1351_v55  ;;  %v1365_v60 = vmul.f32 %v1364_v57, %v1350_v54 }
0x115b   : > { %3207 = vrcp.f32 %v1352_v56  ;;  %v1366_v63 = vmul.f32 1.442695, %v1365_v60 }
0x115d   : > { %3209 = vpow2.f32 %v1366_v63 }
0x1165   : > { %v3208_v58 = vpop.eup %3207 }
0x1166   : > { %v1355_v61 = vmul.f32 1.0614054, %v3208_v58 }
0x1167   : > { %v3210_v6 = vpop.eup %3209 }
0x1168   : > { %v1356_v62 = vadd.f32 -1.4531521, %v1355_v61 }
0x116a   : > { %v1357_v59 = vmul.f32 %v3208_v58, %v1356_v62 }
0x116c   : > { %v1358_v0 = vadd.f32 1.4214138, %v1357_v59 }
0x116e   : > { %v1359_v1 = vmul.f32 %v3208_v58, %v1358_v0 }
0x1170   : > { %v1360_v2 = vadd.f32 -0.28449672, %v1359_v1 }
0x1172   : > { %v1361_v3 = vmul.f32 %v3208_v58, %v1360_v2 }
0x1174   : > { %v1362_v4 = vadd.f32 0.2548296, %v1361_v3 }
0x1176   : > { %v1363_v5 = vmul.f32 %v3208_v58, %v1362_v4 }
0x1178   : > { %v1368_v7 = vmul.f32 %v3210_v6, %v1363_v5 }
0x117a   : > { %v1369_v8 = vsub.f32 1.0, %v1368_v7 }
0x117c   : > { %v1371_v9 = vsub.f32 0.0, %v1369_v8 }
0x117e   : > { %v1372_v10 = vsel %vm1370_vm10, %v1369_v8, %v1371_v9 }
0x117f   : > { %v1374_v12 = vadd.f32 1.0, %v1372_v10 }
0x1181   : > { %v1375_v13 = vmul.f32 %v1374_v12, %v1373_v11 }
0x1183   : > { %v1376_v14 = vpack.c.bf16 %v1375_v13, %v1375_v13 }
0x1185   : > { %2988 = vmatmul.mubr.bf16.vlgmr.msra.gmra.mrb[20].mxu1 %v1376_v14 }
0x1186   : > { %3031 = vmatprep.mubr.msk.f32.mxu1 %vm3305_vm2, %v3304_v45 }
0x1258   : > { %v1480_v16 = vpop.f32.mrb[20].mxu1 }
0x1259   : > { %v1481_v17 = vadd.f32 %v2755_v15, %v1480_v16  ;;  %v2989_v19 = vpop.f32.mrb[21].mxu1 }
0x125a   : > { %v1483_v20 = vpop.f32.mrb[22].mxu1 }
0x125b   : > { %v3653_v21 = vadd.f32 %v1481_v17, %v3589_v18  ;;  %v2990_v22 = vpop.f32.mrb[23].mxu1  ;;  %v3169_v18 = vld [vmem:[%s3903_s3 + $0x48] ss:$12 sps:$4 sm:$0xff]  }
0x125c   : > { %2994 = vmatpush3.bf16.msra.mxu0 %v3169_v18 }
0x125d   : > { %v1496_v23 = vsel %vm395_vm1, %v3653_v21, 0.0  ;;  %2999 = vmatprep.subr.mxu0 %v3304_v45 }
0x125e   : > { %1497 = vadd.xlane.f32.xlu0 %v1496_v23 }
0x12eb   : > { %v1498_v24 = vpop.xlane.xlu0 %1497 }
0x12ec   : > { %v1499_v25 = vmul.f32 0.03125, %v1498_v24 }
0x12ee   : > { %v1500_v26 = vsub.f32 %v3653_v21, %v1499_v25 }
0x12f0   : > { %v1501_v37 = vmul.f32 %v1500_v26, %v1500_v26 }
0x12f2   : > { %v1502_v27 = vsel %vm395_vm1, %v1501_v37, 0.0 }
0x12f3   : > { %1503 = vadd.xlane.f32.xlu0 %v1502_v27 }
0x1380   : > { %v1504_v29 = vpop.xlane.xlu0 %1503 }
0x1381   : > { %v1505_v30 = vmul.f32 0.03125, %v1504_v29 }
0x1383   : > { %v1506_v31 = vadd.f32 1e-05, %v1505_v30 }
0x1385   : > { %3211 = vrsqrt.f32 %v1506_v31 }
0x138f   : > { %v3212_v32 = vpop.eup %3211 }
0x1390   : > { %v1508_v34 = vmul.f32 %v3212_v32, %v1500_v26 }
0x1392   : > { %v1514_v36 = vmul.f32 %v2772_v33, %v1508_v34 }
0x1394   : > { %v1520_v38 = vadd.f32 %v2773_v35, %v1514_v36 }
0x1396   : > { %v1521_v39 = vpack.c.bf16 %v1520_v38, %v1520_v38 }
0x1398   : > { %2996 = vmatmul.mubr.msk.bf16.vlgmr.msra.gmra.mrb[12].mxu0 %vm473_vm3, %v1521_v39 }
0x1399   : > { %3001 = vmatprep.mubr.msk.f32.mxu0 %vm3305_vm2, %v3304_v45 }
0x146b   : > { %v1576_v41 = vpop.f32.mrb[12].mxu0 }
0x146c   : > { %v3679_v42 = vadd.f32 %v2774_v40, %v1576_v41  ;;  %v2997_v43 = vpop.f32.mrb[13].mxu0 }
0x146d   : > { %v1579_v44 = vpop.f32.mrb[14].mxu0 }
0x146e   : > { %1583 = vrot.lane.b32.xlu0 %v3679_v42, %s3306_s10  ;;  %v2998_v46 = vpop.f32.mrb[15].mxu0  ;;  %s3915_s10 = smov 72  }
0x1472   : > { %1750 = vrot.lane.b32.xlu0 %v3679_v42, %s3307_s19  ;;  %s3916_s19 = smov 48  }
0x14e0   : > { %v1584_v47 = vpop.permute.xlu0 %1583 }
0x14e1   : > { %3000 = vmatpush3.xpose.msk.msra.mxu0 %vm520_vm4, %v1584_v47 }
0x14e2   : > { %3004 = vmatprep.subr.mxu0 %v3304_v45 }
0x14e4   : > { %3002 = vmatmul.mubr.msk.f32.vlgmr.msra.gmra.mrb[16].mxu0 %vm520_vm4, %v3679_v42  ;;  %v1751_v62 = vpop.permute.xlu0 %1750 }
0x14e5   : > { %3006 = vmatprep.mubr.msk.f32.mxu0 %vm3305_vm2, %v3304_v45 }
0x15b7   : > { %v1655_v48 = vpop.f32.mrb[16].mxu0 }
0x15b8   : > { %v1659_v49 = vmul.f32 0.35355338, %v1655_v48  ;;  %v3003_v50 = vpop.f32.mrb[17].mxu0 }
0x15ba   : > { %v1660_v51 = vsel %vm596_vm5, %v1659_v49, -inf }
0x15bb   : > { %1661 = vmax.xlane.f32.xlu1 %v1660_v51 }
0x15cc   : > { %1671 = vrot.lane.b32.xlu1 %v3679_v42, %s3308_s11  ;;  %s3917_s11 = smov 8  }
0x1648   : > { %v1662_v52 = vpop.xlane.xlu1 %1661 }
0x1649   : > { %v1663_v53 = vsub.f32 %v1659_v49, %v1662_v52  ;;  %v3172_v49 = vld [vmem:[%s3903_s3 + $0x4c] ss:$12 sps:$4 sm:$0xff]  }
0x164b   : > { %v1664_v54 = vmul.f32 1.442695, %v1663_v53 }
0x164c   : > { %v1672_v55 = vpop.permute.xlu1 %1671 }
0x164d   : > { %3213 = vpow2.f32 %v1664_v54  ;;  %3005 = vmatpush3.msk.msra.mxu0 %vm614_vm6, %v1672_v55 }
0x164e   : > { %3009 = vmatprep.subr.mxu0 %v3304_v45 }
0x1657   : > { %v3214_v56 = vpop.eup %3213 }
0x1658   : > { %v1666_v57 = vsel %vm596_vm5, %v3214_v56, 0.0 }
0x1659   : > { %1667 = vadd.xlane.f32.xlu1 %v1666_v57 }
0x166a   : > { %1748 = vrot.lane.b32.xlu1 %v3679_v42, %s3309_s12  ;;  %s3918_s12 = smov 40  }
0x166e   : > { %1917 = vrot.lane.b32.xlu1 %v3679_v42, %s3312_s15 }
0x16e6   : > { %v1668_v58 = vpop.xlane.xlu1 %1667 }
0x16e7   : > { %3215 = vrcp.f32 %v1668_v58 }
0x16ea   : > { %v1749_v63 = vpop.permute.xlu1 %1748 }
0x16ee   : > { %v1918_v11 = vpop.permute.xlu1 %1917 }
0x16f1   : > { %v3216_v60 = vpop.eup %3215 }
0x16f2   : > { %v1670_v61 = vmul.f32 %v3216_v60, %v3214_v56 }
0x16f4   : > { %3007 = vmatmul.mubr.msk.f32.vlgmr.msra.gmra.mrb[18].mxu0 %vm610_vm7, %v1670_v61 }
0x16f5   : > { %3010 = vmatpush3.xpose.msk.msra.mxu0 %vm520_vm4, %v1751_v62  ;;  %3011 = vmatprep.mubr.msk.f32.mxu0 %vm3305_vm2, %v3304_v45  ;;  %v2794_v62 = vld [vmem:[%s3902_s2 + $0x14] ss:$0 sm:$0xff] }
0x16f6   : > { %3014 = vmatprep.subr.mxu0 %v3304_v45 }
0x16f8   : > { %3012 = vmatmul.mubr.msk.f32.vlgmr.msra.gmra.mrb[20].mxu0 %vm520_vm4, %v1749_v63 }
0x16f9   : > { %3016 = vmatprep.mubr.msk.f32.mxu0 %vm3305_vm2, %v3304_v45 }
0x17c7   : > { %v3709_v59 = vpop.f32.mrb[18].mxu0 }
0x17c8   : > { %v3008_v0 = vpop.f32.mrb[19].mxu0 }
0x17cb   : > { %v1822_v1 = vpop.f32.mrb[20].mxu0 }
0x17cc   : > { %v1826_v2 = vmul.f32 0.35355338, %v1822_v1  ;;  %v3013_v3 = vpop.f32.mrb[21].mxu0 }
0x17ce   : > { %v1827_v4 = vsel %vm596_vm5, %v1826_v2, -inf }
0x17cf   : > { %1828 = vmax.xlane.f32.xlu0 %v1827_v4 }
0x17e5   : > { %1838 = vrot.lane.b32.xlu0 %v3679_v42, %s3310_s13  ;;  %s2832_s13 = sshll.u32 %s3377_s25, 4  ;;  %s3320_s25 = smov [#allocation2]  }
0x17e6   : > { %s3243_s16 = sshll.u32 %s3320_s25, 4  ;;  %s3244_s16 = int_to_ptr.vmem [resolvable:$false] %s3243_s16 }
0x17e7   : > { %s3245_s20 = scalar_lea.vmem %s3244_s16, 32 }
0x17e9   : > { %1915 = vrot.lane.b32.xlu0 %v3679_v42, %s3311_s14 }
0x17ed   : > { %2082 = vrot.lane.b32.xlu0 %v3679_v42, %s3314_s17 }
0x185c   : > { %v1829_v5 = vpop.xlane.xlu0 %1828 }
0x185d   : > { %v1830_v6 = vsub.f32 %v1826_v2, %v1829_v5 }
0x185f   : > { %v1831_v7 = vmul.f32 1.442695, %v1830_v6 }
0x1860   : > { %v1839_v8 = vpop.permute.xlu0 %1838 }
0x1861   : > { %3217 = vpow2.f32 %v1831_v7  ;;  %3015 = vmatpush3.msk.msra.mxu0 %vm614_vm6, %v1839_v8 }
0x1862   : > { %3019 = vmatprep.subr.mxu0 %v3304_v45 }
0x1864   : > { %v1916_v13 = vpop.permute.xlu0 %1915 }
0x1868   : > { %v2083_v15 = vpop.permute.xlu0 %2082 }
0x186b   : > { %v3218_v9 = vpop.eup %3217 }
0x186c   : > { %v1833_v10 = vsel %vm596_vm5, %v3218_v9, 0.0 }
0x186d   : > { %1834 = vadd.xlane.f32.xlu1 %v1833_v10  ;;  %v3173_v10 = vld [vmem:[%s3903_s3 + $0x38] ss:$12 sps:$4 sm:$0xff]  }
0x187e   : > { %2084 = vrot.lane.b32.xlu1 %v3679_v42, %s3915_s10 }
0x18fa   : > { %v1835_v12 = vpop.xlane.xlu1 %1834 }
0x18fb   : > { %3219 = vrcp.f32 %v1835_v12 }
0x18fe   : > { %v2085_v14 = vpop.permute.xlu1 %2084 }
0x18ff   : > { %3030 = vmatpush3.xpose.msk.msra.mxu1 %vm520_vm4, %v2085_v14 }
0x1900   : > { %3039 = vmatprep.subr.bf16.mxu1 %v3304_v45 }
0x1902   : > { %3032 = vmatmul.mubr.msk.f32.vlgmr.msra.gmra.mrb[24].mxu1 %vm520_vm4, %v2083_v15  ;;  %v2798_v15 = vld [vmem:[%s3902_s2 + $0x15] ss:$0 sm:$0xff] }
0x1903   : > { %3043 = vmatprep.mubr.msk.bf16.mxu1 %vm3305_vm2, %v3304_v45 }
0x1905   : > { %v3220_v16 = vpop.eup %3219 }
0x1906   : > { %v1837_v17 = vmul.f32 %v3220_v16, %v3218_v9 }
0x1908   : > { %3017 = vmatmul.mubr.msk.f32.vlgmr.msra.gmra.mrb[22].mxu0 %vm610_vm7, %v1837_v17  ;;  %v2799_v17 = vld [vmem:[%s3902_s2 + $0x16] ss:$0 sm:$0xff] }
0x1909   : > { %3020 = vmatpush3.xpose.msk.msra.mxu0 %vm520_vm4, %v1918_v11  ;;  %3021 = vmatprep.mubr.msk.f32.mxu0 %vm3305_vm2, %v3304_v45 }
0x190a   : > { %3024 = vmatprep.subr.mxu0 %v3304_v45 }
0x190c   : > { %3022 = vmatmul.mubr.msk.f32.vlgmr.msra.gmra.mrb[24].mxu0 %vm520_vm4, %v1916_v13 }
0x190d   : > { %3026 = vmatprep.mubr.msk.f32.mxu0 %vm3305_vm2, %v3304_v45 }
0x19d5   : > { %v2156_v19 = vpop.f32.mrb[24].mxu1 }
0x19d6   : > { %v2160_v20 = vmul.f32 0.35355338, %v2156_v19  ;;  %v3033_v22 = vpop.f32.mrb[25].mxu1 }
0x19d8   : > { %v2161_v23 = vsel %vm596_vm5, %v2160_v20, -inf }
0x19d9   : > { %2162 = vmax.xlane.f32.xlu0 %v2161_v23  ;;  %v3175_v23 = vld [vmem:[%s3904_s4 + $0x40] sm:$0xff]  }
0x19db   : > { %v1911_v24 = vpop.f32.mrb[22].mxu0 }
0x19dc   : > { %v3018_v25 = vpop.f32.mrb[23].mxu0 }
0x19dd   : > { %v3177_v25 = vld [vmem:[%s3904_s4 + $0x50] sm:$0xff]  }
0x19df   : > { %v1989_v26 = vpop.f32.mrb[24].mxu0 }
0x19e0   : > { %v1993_v37 = vmul.f32 0.35355338, %v1989_v26  ;;  %v3023_v27 = vpop.f32.mrb[25].mxu0  ;;  %v3178_v26 = vld [vmem:[%s3904_s4 + $0x58] sm:$0xff]  }
0x19e1   : > { %v3180_v27 = vld [vmem:[%s3904_s4 + $0x68] sm:$0xff]  }
0x19e2   : > { %v1994_v28 = vsel %vm596_vm5, %v1993_v37, -inf }
0x19e3   : > { %1995 = vmax.xlane.f32.xlu1 %v1994_v28  ;;  %v3181_v28 = vld [vmem:[%s3904_s4 + $0x70] sm:$0xff]  }
0x19f4   : > { %2005 = vrot.lane.b32.xlu1 %v3679_v42, %s3916_s19 }
0x19f8   : > { %2250 = vrot.lane.b32.xlu1 %v1911_v24, %s3917_s11  ;;  %v3176_v24 = vld [vmem:[%s3904_s4 + $0x48] sm:$0xff]  }
0x1a66   : > { %v2163_v18 = vpop.xlane.xlu0 %2162 }
0x1a67   : > { %v2164_v29 = vsub.f32 %v2160_v20, %v2163_v18  ;;  %v3182_v18 = vld [vmem:[%s3904_s4 + $0x78] sm:$0xff]  }
0x1a69   : > { %v2165_v30 = vmul.f32 1.442695, %v2164_v29  ;;  %v2800_v29 = vld [vmem:[%s3902_s2 + $0x17] ss:$0 sm:$0xff] }
0x1a6b   : > { %3221 = vpow2.f32 %v2165_v30 }
0x1a70   : > { %v1996_v31 = vpop.xlane.xlu1 %1995 }
0x1a71   : > { %v1997_v32 = vsub.f32 %v1993_v37, %v1996_v31  ;;  %v3179_v37 = vld [vmem:[%s3904_s4 + $0x60] sm:$0xff]  }
0x1a73   : > { %v1998_v33 = vmul.f32 1.442695, %v1997_v32 }
0x1a74   : > { %v2006_v34 = vpop.permute.xlu1 %2005 }
0x1a75   : > { %v3222_v35 = vpop.eup %3221  ;;  %3223 = vpow2.f32 %v1998_v33  ;;  %3025 = vmatpush3.msk.msra.mxu0 %vm614_vm6, %v2006_v34 }
0x1a76   : > { %v2167_v36 = vsel %vm596_vm5, %v3222_v35, 0.0  ;;  %3034 = vmatprep.subr.mxu0 %v3304_v45 }
0x1a77   : > { %2168 = vadd.xlane.f32.xlu0 %v2167_v36 }
0x1a78   : > { %v2251_v54 = vpop.permute.xlu1 %2250 }
0x1a79   : > { %v2261_v56 = vsel %vm520_vm4, %v3709_v59, %v2251_v54 }
0x1a7f   : > { %v3224_v38 = vpop.eup %3223 }
0x1a80   : > { %v2000_v39 = vsel %vm596_vm5, %v3224_v38, 0.0 }
0x1a81   : > { %2001 = vadd.xlane.f32.xlu0 %v2000_v39 }
0x1a97   : > { %2172 = vrot.lane.b32.xlu0 %v3679_v42, %s3918_s12  ;;  %v3171_v42 = vld [vmem:[%s3903_s3 + $0x34] ss:$12 sps:$4 sm:$0xff]   ;;  %s242_s12 = sand.u32 1, %s3293_s22  }
0x1a98   : > { %3040 = vmatpush3.bf16.msra.mxu1 %v3171_v42  ;;  %s243_s14 = scalar_lea.vmem [#allocation2], %s242_s12  ;;  %s2635_s29 = scalar_lea.sflag [#allocation3], %s242_s12 }
0x1a99   : > { %3041 = vmatprep.subr.bf16.mxu1 %v3304_v45  ;;  %s2647_s15 = sshll.u32 %s243_s14, 4  ;;  %s3859_s15 = int_to_ptr.vmem [resolvable:$true] %s2647_s15 }
0x1a9a   : > { %s3239_s9 = scalar_lea.vmem %s3859_s15, 16  ;;  %p3246_p0 = scmp.lt.s32.totalorder %s3859_s15, %s3244_s16 }
0x1a9b   : > { %p3240_p11 = scmp.ne.s32.totalorder %s3859_s15, %s3239_s9  ;;  %p3247_p1 = scmp.lt.s32.totalorder %s3245_s20, %s3239_s9 }
0x1a9c   : > { %3042 = vmatpush3.bf16.msra.mxu1 %v3172_v49 }
0x1a9d   : > { %3055 = vmatprep.subr.bf16.mxu1 %v3304_v45  ;;  %p3241_p12 = pnand %p3240_p11, %p3394_p5  ;;  %p3248_p2 = por %p3247_p1, %p3246_p0 }
0x1a9f   : > { %p3242_p13 = pneg %p3241_p12 }
0x1aa1   : > { %p3249_p3 = pnand %p3248_p2, %p3242_p13 }
0x1b04   : > { %v2169_v40 = vpop.xlane.xlu0 %2168 }
0x1b0e   : > { %v2002_v41 = vpop.xlane.xlu0 %2001 }
0x1b0f   : > { %3225 = vrcp.f32 %v2002_v41 }
0x1b10   : > { %3227 = vrcp.f32 %v2169_v40 }
0x1b12   : > { %v2173_v47 = vpop.permute.xlu0 %2172 }
0x1b19   : > { %v3226_v43 = vpop.eup %3225 }
0x1b1a   : > { %v2004_v44 = vmul.f32 %v3226_v43, %v3224_v38  ;;  %v3228_v46 = vpop.eup %3227 }
0x1b1b   : > { %v2171_v48 = vmul.f32 %v3228_v46, %v3222_v35 }
0x1b1c   : > { %3027 = vmatmul.mubr.msk.f32.vlgmr.msra.gmra.mrb[26].mxu0 %vm610_vm7, %v2004_v44 }
0x1b1d   : > { %3035 = vmatpush3.msk.msra.mxu0 %vm614_vm6, %v2173_v47  ;;  %3036 = vmatprep.mubr.msk.f32.mxu0 %vm3305_vm2, %v3304_v45 }
0x1b1e   : > { %3047 = vmatprep.subr.bf16.mxu0 %v3304_v45 }
0x1b20   : > { %3037 = vmatmul.mubr.msk.f32.vlgmr.msra.gmra.mrb[28].mxu0 %vm610_vm7, %v2171_v48 }
0x1b21   : > { %3051 = vmatprep.mubr.msk.bf16.mxu0 %vm3305_vm2, %v3304_v45  ;;  %3048 = vmatpush3.bf16.msra.mxu0 %v3173_v10 }
0x1b22   : > { %3049 = vmatprep.subr.bf16.mxu0 %v3304_v45 }
0x1bef   : > { %v2078_v50 = vpop.f32.mrb[26].mxu0 }
0x1bf0   : > { %2254 = vrot.lane.b32.xlu1 %v2078_v50, %s3919_s18  ;;  %v3028_v51 = vpop.f32.mrb[27].mxu0 }
0x1bf3   : > { %v2245_v52 = vpop.f32.mrb[28].mxu0 }
0x1bf4   : > { %2258 = vrot.lane.b32.xlu1 %v2245_v52, %s3920_s28  ;;  %v3038_v53 = vpop.f32.mrb[29].mxu0  ;;  %s3857_s28 = scalar_lea.hbm %s3906_s6, %s2832_s13 }
0x1c62   : > { %v2255_v55 = vpop.permute.xlu1 %2254 }
0x1c63   : > { %v2262_v57 = vsel %vm1201_vm8, %v2261_v56, %v2255_v55 }
0x1c66   : > { %v2259_v58 = vpop.permute.xlu1 %2258 }
0x1c67   : > { %v2263_v60 = vsel %vm1203_vm9, %v2262_v57, %v2259_v58 }
0x1c68   : > { %v2264_v61 = vpack.c.bf16 %v2263_v60, %v2263_v60 }
0x1c6a   : > { %3044 = vmatmul.mubr.msk.bf16.vlgmr.msra.gmra.mrb[28].mxu1 %vm473_vm3, %v2264_v61 }
0x1c6b   : > { %3071 = vmatprep.mubr.msk.bf16.mxu1 %vm3305_vm2, %v3304_v45  ;;  %3056 = vmatpush3.bf16.msra.mxu1 %v3175_v23 }
0x1c6c   : > { %3057 = vmatprep.subr.bf16.mxu1 %v3304_v45 }
0x1c6f   : > { %3058 = vmatpush3.bf16.msra.mxu1 %v3176_v24 }
0x1c70   : > { %3059 = vmatprep.subr.bf16.mxu1 %v3304_v45 }
0x1c73   : > { %3060 = vmatpush3.bf16.msra.mxu1 %v3177_v25 }
0x1c74   : > { %3061 = vmatprep.subr.bf16.mxu1 %v3304_v45 }
0x1c77   : > { %3062 = vmatpush3.bf16.msra.mxu1 %v3178_v26 }
0x1c78   : > { %3063 = vmatprep.subr.bf16.mxu1 %v3304_v45 }
0x1c7b   : > { %3064 = vmatpush3.bf16.msra.mxu1 %v3179_v37 }
0x1c7c   : > { %3065 = vmatprep.subr.bf16.mxu1 %v3304_v45 }
0x1c7f   : > { %3066 = vmatpush3.bf16.msra.mxu1 %v3180_v27 }
0x1c80   : > { %3067 = vmatprep.subr.bf16.mxu1 %v3304_v45 }
0x1c83   : > { %3068 = vmatpush3.bf16.msra.mxu1 %v3181_v28 }
0x1c84   : > { %3069 = vmatprep.subr.bf16.mxu1 %v3304_v45 }
0x1c87   : > { %3070 = vmatpush3.bf16.msra.mxu1 %v3182_v18 }
0x1d3d   : > { %v2315_v63 = vpop.f32.mrb[28].mxu1 }
0x1d3e   : > { %v2316_v0 = vadd.f32 %v2794_v62, %v2315_v63  ;;  %v3045_v1 = vpop.f32.mrb[29].mxu1 }
0x1d3f   : > { %v2318_v2 = vpop.f32.mrb[30].mxu1 }
0x1d40   : > { %v3776_v59 = vadd.f32 %v2316_v0, %v3653_v21  ;;  %v3046_v3 = vpop.f32.mrb[31].mxu1  ;;  %v3174_v21 = vld [vmem:[%s3903_s3 + $0x50] ss:$12 sps:$4 sm:$0xff]   ;;  %v2820_v0 = vld [vmem:[%s3902_s2 + $0x18] ss:$0 sm:$0xff] }
0x1d41   : > { %3050 = vmatpush3.bf16.msra.mxu0 %v3174_v21 }
0x1d42   : > { %v2322_v4 = vsel %vm395_vm1, %v3776_v59, 0.0  ;;  %3075 = vmatprep.subr.bf16.mxu0 %v3304_v45 }
0x1d43   : > { %2323 = vadd.xlane.f32.xlu0 %v2322_v4 }
0x1dd0   : > { %v2324_v5 = vpop.xlane.xlu0 %2323 }
0x1dd1   : > { %v2325_v6 = vmul.f32 0.03125, %v2324_v5 }
0x1dd3   : > { %v2326_v7 = vsub.f32 %v3776_v59, %v2325_v6 }
0x1dd5   : > { %v2327_v8 = vmul.f32 %v2326_v7, %v2326_v7 }
0x1dd7   : > { %v2328_v9 = vsel %vm395_vm1, %v2327_v8, 0.0 }
0x1dd8   : > { %2329 = vadd.xlane.f32.xlu1 %v2328_v9 }
0x1e65   : > { %v2330_v11 = vpop.xlane.xlu1 %2329 }
0x1e66   : > { %v2331_v12 = vmul.f32 0.03125, %v2330_v11 }
0x1e68   : > { %v2332_v13 = vadd.f32 1e-05, %v2331_v12  ;;  %v3183_v12 = vld [vmem:[%s3905_s5] sm:$0xff]  }
0x1e6a   : > { %3229 = vrsqrt.f32 %v2332_v13  ;;  %v3184_v13 = vld [vmem:[%s3905_s5 + $0x8] sm:$0xff]  }
0x1e74   : > { %v3230_v14 = vpop.eup %3229 }
0x1e75   : > { %v2334_v16 = vmul.f32 %v3230_v14, %v2326_v7 }
0x1e77   : > { %v2340_v19 = vmul.f32 %v2798_v15, %v2334_v16 }
0x1e79   : > { %v2346_v20 = vadd.f32 %v2799_v17, %v2340_v19  ;;  %v2561_v17 = vld [vmem:[%s3902_s2 + $0x7] sm:$0x1] }
0x1e7b   : > { %v2347_v22 = vpack.c.bf16 %v2346_v20, %v2346_v20  ;;  %v2563_v20 = vld [vmem:[%s3902_s2 + $0x8] sm:$0x1] }
0x1e7d   : > { %3052 = vmatmul.mubr.msk.bf16.vlgmr.msra.gmra.mrb[32].mxu0 %vm473_vm3, %v2347_v22 }
0x1e7e   : > { %3079 = vmatprep.mubr.msk.bf16.mxu0 %vm3305_vm2, %v3304_v45  ;;  %3076 = vmatpush3.bf16.msra.mxu0 %v3183_v12 }
0x1e7f   : > { %3077 = vmatprep.subr.bf16.mxu0 %v3304_v45 }
0x1e82   : > { %3078 = vmatpush3.bf16.msra.mxu0 %v3184_v13 }
0x1f50   : > { %v2402_v30 = vpop.f32.mrb[32].mxu0 }
0x1f51   : > { %v2403_v31 = vadd.f32 %v2800_v29, %v2402_v30  ;;  %v3053_v32 = vpop.f32.mrb[33].mxu0 }
0x1f52   : > { %v2405_v33 = vpop.f32.mrb[34].mxu0 }
0x1f53   : > { %v2408_v34 = vmul.f32 0.70710677, %v2403_v31  ;;  %v3054_v35 = vpop.f32.mrb[35].mxu0  ;;  %v2432_v60 = vmul.f32 0.5, %v2403_v31 }
0x1f55   : > { %v2409_v36 = vand.u32 2147483647, %v2408_v34  ;;  %vm2429_vm11 = vcmp.ge.f32.partialorder %v2408_v34, 0.0 }
0x1f57   : > { %v2410_v38 = vmul.f32 0.3275911, %v2409_v36  ;;  %v2423_v40 = vsub.f32 0.0, %v2409_v36 }
0x1f59   : > { %v2411_v39 = vadd.f32 1.0, %v2410_v38  ;;  %v2424_v43 = vmul.f32 %v2423_v40, %v2409_v36 }
0x1f5b   : > { %3231 = vrcp.f32 %v2411_v39  ;;  %v2425_v47 = vmul.f32 1.442695, %v2424_v43 }
0x1f5d   : > { %3233 = vpow2.f32 %v2425_v47 }
0x1f65   : > { %v3232_v41 = vpop.eup %3231 }
0x1f66   : > { %v2414_v44 = vmul.f32 1.0614054, %v3232_v41 }
0x1f67   : > { %v3234_v54 = vpop.eup %3233 }
0x1f68   : > { %v2415_v46 = vadd.f32 -1.4531521, %v2414_v44 }
0x1f6a   : > { %v2416_v48 = vmul.f32 %v3232_v41, %v2415_v46 }
0x1f6c   : > { %v2417_v42 = vadd.f32 1.4214138, %v2416_v48 }
0x1f6e   : > { %v2418_v49 = vmul.f32 %v3232_v41, %v2417_v42 }
0x1f70   : > { %v2419_v50 = vadd.f32 -0.28449672, %v2418_v49 }
0x1f72   : > { %v2420_v51 = vmul.f32 %v3232_v41, %v2419_v50 }
0x1f74   : > { %v2421_v52 = vadd.f32 0.2548296, %v2420_v51 }
0x1f76   : > { %v2422_v53 = vmul.f32 %v3232_v41, %v2421_v52 }
0x1f78   : > { %v2427_v55 = vmul.f32 %v3234_v54, %v2422_v53 }
0x1f7a   : > { %v2428_v56 = vsub.f32 1.0, %v2427_v55 }
0x1f7c   : > { %v2430_v57 = vsub.f32 0.0, %v2428_v56 }
0x1f7e   : > { %v2431_v58 = vsel %vm2429_vm11, %v2428_v56, %v2430_v57 }
0x1f7f   : > { %v2433_v61 = vadd.f32 1.0, %v2431_v58 }
0x1f81   : > { %v2434_v62 = vmul.f32 %v2433_v61, %v2432_v60 }
0x1f83   : > { %v2435_v63 = vpack.c.bf16 %v2434_v62, %v2434_v62 }
0x1f85   : > { %3072 = vmatmul.mubr.bf16.vlgmr.msra.gmra.mrb[32].mxu1 %v2435_v63 }
0x2058   : > { %v2540_v1 = vpop.f32.mrb[32].mxu1 }
0x2059   : > { %v2541_v2 = vadd.f32 %v2820_v0, %v2540_v1  ;;  %v3073_v3 = vpop.f32.mrb[33].mxu1 }
0x205a   : > { %v2543_v4 = vpop.f32.mrb[34].mxu1 }
0x205b   : > { %v3074_v5 = vpop.f32.mrb[35].mxu1  ;;  %v2546_v6 = vadd.f32 %v2541_v2, %v3776_v59 }
0x205d   : > { %v2548_v7 = vsel %vm2547_vm12, %v2546_v6, 0.0 }
0x205e   : > { %2549 = vadd.xlane.f32.xlu0 %v2548_v7 }
0x20eb   : > { %v2550_v8 = vpop.xlane.xlu0 %2549 }
0x20ec   : > { %v2551_v9 = vmul.f32 0.03125, %v2550_v8 }
0x20ee   : > { %v2552_v10 = vsub.f32 %v2546_v6, %v2551_v9 }
0x20f0   : > { %v2553_v21 = vmul.f32 %v2552_v10, %v2552_v10 }
0x20f2   : > { %v2554_v11 = vsel %vm2547_vm12, %v2553_v21, 0.0 }
0x20f3   : > { %2555 = vadd.xlane.f32.xlu0 %v2554_v11 }
0x2180   : > { %v2556_v59 = vpop.xlane.xlu0 %2555 }
0x2181   : > { %v2557_v14 = vmul.f32 0.03125, %v2556_v59 }
0x2183   : > { %v2558_v15 = vadd.f32 1e-05, %v2557_v14 }
0x2185   : > { %3235 = vrsqrt.f32 %v2558_v15 }
0x218f   : > { %v3236_v16 = vpop.eup %3235 }
0x2190   : > { %v2560_v19 = vmul.f32 %v3236_v16, %v2552_v10 }
0x2192   : > { %v2562_v22 = vmul.f32 %v2561_v17, %v2560_v19 }
0x2194   : > { %v2564_v23 = vadd.f32 %v2563_v20, %v2562_v22 }
0x2196   : > { %v2565_v45 = vpack.c.bf16 %v2564_v23, %v2564_v23 }
0x2198   : > { %3080 = vmatmul.mubr.msk.bf16.vlgmr.msra.gmra.mrb[36].mxu0 %vm473_vm3, %v2565_v45 }
0x226b   : > { %v2619_v24 = vpop.f32.mrb[36].mxu0 }
0x226c   : > { %v2625_v25 = vmul.f32 %v2619_v24, %v2619_v24  ;;  %v3081_v26 = vpop.f32.mrb[37].mxu0 }
0x226d   : > { %v2622_v37 = vpop.f32.mrb[38].mxu0 }
0x226e   : > { %v3082_v27 = vpop.f32.mrb[39].mxu0  ;;  %v2627_v28 = vsel %vm2626_vm13, %v2625_v25, 0.0 }
0x226f   : > { %2628 = vadd.xlane.f32.xlu0 %v2627_v28 }
0x22fc   : > { %v2629_v18 = vpop.xlane.xlu0 %2628 }
0x22fd   : > { %v2630_v29 = vmax.f32 %v2629_v18, 1e-24 }
0x22ff   : > { %3237 = vrsqrt.f32 %v2630_v29 }
0x2309   : > { %v3238_v30 = vpop.eup %3237 }
0x230a   : > { %v2632_v31 = vmul.f32 %v3238_v30, %v2619_v24 }
0x230c   : > { %2633 = vst.msk [vmem:[%s243_s14] sm:$0x1] %vm2626_vm13, %v2632_v31 }
0x230d   : > { %3252 = shalt.err (!%p3249_p3)
}
0x230e   : > { %s3253_s26 = scalar_lea.hbm %s3857_s28, 16  ;;  %s3257_s11 = scalar_lea.hbm %s3906_s6, 32 }
0x230f   : > { %p3254_p4 = scmp.ne.s32.totalorder %s3857_s28, %s3253_s26  ;;  %p3258_p9 = scmp.lt.u32.totalorder %s3857_s28, %s3906_s6 }
0x2310   : > { %p3259_p10 = scmp.lt.u32.totalorder %s3257_s11, %s3253_s26  ;;  %p3261_p12 = scmp.lt.u32.totalorder %s3253_s26, %s3857_s28 }
0x2311   : > { %p3255_p7 = pnand %p3254_p4, %p3394_p5 }
0x2312   : > { %p3260_p11 = por %p3259_p10, %p3258_p9 }
0x2313   : > { %p3256_p8 = pneg %p3255_p7 }
0x2314   : > { %p3262_p13 = por %p3261_p12, %p3260_p11 }
0x2316   : > { %p3263_p0 = pnand %p3262_p13, %p3256_p8 }
0x2318   : > { %3266 = shalt.err (!%p3263_p0)
}
0x2319   : > { %3083 = dma.vmem_to_hbm [thread:$0]  (%p3394_p5), %s3859_s15, 16, %s3857_s28, %s2635_s29  }
0x231a PF: > { %p3089_p1 = scmp.ge.s32.totalorder %s3301_s24, 2  ;;  %s2659_s14 = sand.u32 1, %s3289_s21  }
0x231b   : > { %s2660_s17 = scalar_lea.sflag [#allocation3], %s2659_s14 }
0x231c   : > { %p3086_p2 = pnand %p3089_p1, %p3398_p6 }
0x231e   : > { %3284 = dma.done.wait (!%p3086_p2), %s2660_s17, 16  }
0x231f   : > { %3286 = vsyncadd (!%p3086_p2), %s2660_s17, 4294967280  ;;  %p16_p3 = scmp.ge.s32.totalorder %s3381_s27, 4   ;;  %s3921_s21 = smov %s3293_s22 }
0x2320   : > { %s3922_s22 = smov %s3297_s23  ;;  %s3923_s23 = smov %s3392_s30 }
0x2321   : > { %s3924_s24 = smov %s3381_s27  ;;  %18 = sbr.rel (!%p16_p3) target bundleno = 3 (0x3), region = 81 }
0x2328   :  { %2664 = vsyncpa [#allocation3], 1 }
0x2329   :  { %2666 = vsyncpa [#allocation3 + $0x1], 1 }

</bundles_post_ra>
